<compile_context>
chip_gen: v7x
topology: tpu7x:2x2x1
jax: 0.10.0
libtpu: 0.0.40
codegen_flags: <defaults>
</compile_context>

<pallas_src>
import jax
import jax.numpy as jnp
from jax import lax
from jax.experimental import pallas as pl
from jax.experimental.pallas import tpu as pltpu

LN_EPS = 1e-5
NORM_EPS = 1e-3


# ----------------------------- Stage 1 kernel ------------------------------ #
def _ln_proj_kernel(x_ref, mask_ref, wl_ref, bl_ref, wr_ref, br_ref,
                    left_ref, right_ref):
    """LayerNorm (affine folded into weights) + left/right projections + mask."""
    x = x_ref[...].astype(jnp.float32)                        # (tm, C_in)
    # var = E[x^2] - mean^2: both reductions issue together (single pass).
    mean = jnp.mean(x, axis=-1, keepdims=True)
    mean_sq = jnp.mean(x * x, axis=-1, keepdims=True)
    var = mean_sq - mean * mean
    xn = (x - mean) * lax.rsqrt(var + LN_EPS)                  # (tm, C_in)
    m = mask_ref[...].astype(jnp.float32)                      # (tm, 1)
    # NOTE(perf, v6e/v7x): casting xn to bfloat16 here (f32 accumulate) would
    # roughly double MXU rate; kept f32 so the correctness check stays tight.
    left = jnp.dot(xn, wl_ref[...], preferred_element_type=jnp.float32) + bl_ref[...]
    right = jnp.dot(xn, wr_ref[...], preferred_element_type=jnp.float32) + br_ref[...]
    left_ref[...] = (left * m).astype(left_ref.dtype)
    right_ref[...] = (right * m).astype(right_ref.dtype)


# ----------------------------- Stage 2 kernel ------------------------------ #
def _pair_kernel(left_ref, right_ref, mask_b_ref, mask_d_ref, w_ref, bias_ref,
                 out_ref, outer_ref):
    """One (tb x td) residue-pair tile of the outer-product-mean."""
    tb, td, _ = out_ref.shape
    c_o = w_ref.shape[0]

    l = left_ref[...]                                          # (S, tb*c_o)
    r = right_ref[...]                                         # (S, td*c_o)
    # outer[(b,c), (d,e)] = sum_a left[a, b, c] * right[a, d, e]
    outer_ref[...] = lax.dot_general(
        l, r, (((0,), (0,)), ((), ())),
        preferred_element_type=jnp.float32)                    # (tb*c_o, td*c_o)

    # norm_t[d, b] = sum_a mask[a, d] * mask[a, b]  (mask blocks arrive [res, S]).
    norm_t = lax.dot_general(
        mask_d_ref[...], mask_b_ref[...], (((1,), (1,)), ((), ())),
        preferred_element_type=jnp.float32)                    # (td, tb)
    inv_t = 1.0 / (norm_t + NORM_EPS)

    w = w_ref[...]                                             # (c_o, c_o, F)
    bias = bias_ref[...]                                       # (1, F)

    for b in range(tb):                                        # static unroll over row tile
        o_b = outer_ref[b * c_o:(b + 1) * c_o, :]              # (c_o, td*c_o)
        o_b3 = o_b.reshape(c_o, td, c_o)                       # (c, d, e)
        # y3[c, d, f] = sum_e o_b3[c, d, e] * w[c, e, f]   (c-batched MXU dot)
        y3 = lax.dot_general(o_b3, w, (((2,), (1,)), ((0,), (0,))),
                             preferred_element_type=jnp.float32)   # (c_o, td, F)
        y = jnp.sum(y3, axis=0) + bias                         # (td, F)
        y = y * inv_t[:, b:b + 1]                              # divide by (norm + eps)
        out_ref[b, :, :] = y.astype(out_ref.dtype)


# ------------------------------- tiling utils ------------------------------ #
def _pick_row_tile(m, target):
    t = min(target, m)
    for cand in range(t, 0, -1):
        if m % cand == 0 and (cand % 8 == 0 or cand == m):
            return cand
    return m


def _pick_res_tile(r, target, c_o):
    t = min(target, r)
    for cand in range(t, 0, -1):
        if r % cand != 0:
            continue
        if cand == r or (cand % 8 == 0 and (cand * c_o) % 128 == 0):
            return cand
    return r


# --------------------------------- wrapper --------------------------------- #
def outer_product_mean(msa_act, msa_mask, params, *,
                       row_tile=512, left_res_tile=8, right_res_tile=128):
    """Pallas TPU forward of AlphaFold OuterProductMean.

    msa_act : [N_seq, N_res, msa_dim]
    msa_mask: [N_seq, N_res]
    returns : [N_res, N_res, num_output_channel]
    """
    s, r, c_in = msa_act.shape
    c_o = params["w_left"].shape[1]
    f = params["output_w"].shape[-1]

    # Fold the LayerNorm affine into the projection weights (free algebraic win).
    gamma = params["ln_scale"].astype(jnp.float32)
    beta = params["ln_offset"].astype(jnp.float32)
    wl = gamma[:, None] * params["w_left"].astype(jnp.float32)
    bl = (beta @ params["w_left"].astype(jnp.float32)
          + params["b_left"].astype(jnp.float32)).reshape(1, c_o)
    wr = gamma[:, None] * params["w_right"].astype(jnp.float32)
    br = (beta @ params["w_right"].astype(jnp.float32)
          + params["b_right"].astype(jnp.float32)).reshape(1, c_o)

    m_rows = s * r
    x2d = msa_act.reshape(m_rows, c_in)
    mask_f = msa_mask.astype(jnp.float32)
    mask2d = mask_f.reshape(m_rows, 1)

    tm = _pick_row_tile(m_rows, row_tile)

    left2d, right2d = pl.pallas_call(
        _ln_proj_kernel,
        out_shape=(jax.ShapeDtypeStruct((m_rows, c_o), jnp.float32),
                   jax.ShapeDtypeStruct((m_rows, c_o), jnp.float32)),
        grid_spec=pltpu.PrefetchScalarGridSpec(
            num_scalar_prefetch=0,
            grid=(m_rows // tm,),
            in_specs=[
                pl.BlockSpec((tm, c_in), lambda i: (i, 0)),    # act rows
                pl.BlockSpec((tm, 1), lambda i: (i, 0)),       # mask rows
                pl.BlockSpec((c_in, c_o), lambda i: (0, 0)),   # w_left (LN folded)
                pl.BlockSpec((1, c_o), lambda i: (0, 0)),      # b_left (LN folded)
                pl.BlockSpec((c_in, c_o), lambda i: (0, 0)),   # w_right (LN folded)
                pl.BlockSpec((1, c_o), lambda i: (0, 0)),      # b_right (LN folded)
            ],
            out_specs=[pl.BlockSpec((tm, c_o), lambda i: (i, 0)),
                       pl.BlockSpec((tm, c_o), lambda i: (i, 0))],
        ),
        compiler_params=pltpu.CompilerParams(
            dimension_semantics=("parallel",)),
    )(x2d, mask2d, wl, bl, wr, br)

    # Free row-major reshapes: [S*R, C_o] -> [S, R*C_o] (lane-dense stage-2 operands).
    left_sr = left2d.reshape(s, r * c_o)
    right_sr = right2d.reshape(s, r * c_o)
    mask_t = mask_f.T                                          # [R, S]

    tb = _pick_res_tile(r, left_res_tile, c_o)
    td = _pick_res_tile(r, right_res_tile, c_o)

    w_out = params["output_w"].astype(jnp.float32)             # (c_o, c_o, F)
    b_out = params["output_b"].astype(jnp.float32).reshape(1, f)

    out = pl.pallas_call(
        _pair_kernel,
        out_shape=jax.ShapeDtypeStruct((r, r, f), msa_act.dtype),
        grid_spec=pltpu.PrefetchScalarGridSpec(
            num_scalar_prefetch=0,
            grid=(r // tb, r // td),
            in_specs=[
                pl.BlockSpec((s, tb * c_o), lambda i, j: (0, i)),   # left slab
                pl.BlockSpec((s, td * c_o), lambda i, j: (0, j)),   # right slab
                pl.BlockSpec((tb, s), lambda i, j: (i, 0)),         # mask (rows i)
                pl.BlockSpec((td, s), lambda i, j: (j, 0)),         # mask (rows j)
                pl.BlockSpec((c_o, c_o, f), lambda i, j: (0, 0, 0)),  # output_w
                pl.BlockSpec((1, f), lambda i, j: (0, 0)),          # output_b
            ],
            out_specs=pl.BlockSpec((tb, td, f), lambda i, j: (i, j, 0)),
            scratch_shapes=[pltpu.VMEM((tb * c_o, td * c_o), jnp.float32)],
        ),
        compiler_params=pltpu.CompilerParams(
            dimension_semantics=("parallel", "parallel")),
    )(left_sr, right_sr, mask_t, mask_t, w_out, b_out)
    return out


# ------------------------------ pure-JAX reference ------------------------- #
def _reference_opm(msa_act, msa_mask, params):
    x = msa_act.astype(jnp.float32)
    mask = msa_mask.astype(jnp.float32)[..., None]             # [S, R, 1]
    mean = jnp.mean(x, axis=-1, keepdims=True)
    var = jnp.mean((x - mean) ** 2, axis=-1, keepdims=True)
    xn = (x - mean) / jnp.sqrt(var + LN_EPS)
    xn = xn * params["ln_scale"] + params["ln_offset"]
    left = mask * (xn @ params["w_left"] + params["b_left"])
    right = mask * (xn @ params["w_right"] + params["b_right"])
    act = jnp.einsum('abc,ade->dceb', left, right)
    act = jnp.einsum('dceb,cef->bdf', act, params["output_w"]) + params["output_b"]
    norm = jnp.einsum('abc,adc->bdc', mask, mask)
    act = act / (norm + NORM_EPS)
    return act.astype(msa_act.dtype)


if __name__ == "__main__":
    # Small, module-consistent shapes:
    #   N_seq=16, N_res=32, msa_dim=64, num_outer_channel=32, num_output_channel=128
    S, R, C_IN, C_O, F = 16, 32, 64, 32, 128

    key = jax.random.PRNGKey(0)
    ks = jax.random.split(key, 10)

    msa_act = jax.random.normal(ks[0], (S, R, C_IN), dtype=jnp.float32)
    msa_mask = (jax.random.uniform(ks[1], (S, R)) > 0.15).astype(jnp.float32)

    params = {
        "ln_scale": 1.0 + 0.1 * jax.random.normal(ks[2], (C_IN,), dtype=jnp.float32),
        "ln_offset": 0.1 * jax.random.normal(ks[3], (C_IN,), dtype=jnp.float32),
        # Linear weights stored as [in, out] (AF2 checkpoint convention).
        "w_left": jax.random.normal(ks[4], (C_IN, C_O), dtype=jnp.float32) / jnp.sqrt(C_IN),
        "b_left": 0.1 * jax.random.normal(ks[5], (C_O,), dtype=jnp.float32),
        "w_right": jax.random.normal(ks[6], (C_IN, C_O), dtype=jnp.float32) / jnp.sqrt(C_IN),
        "b_right": 0.1 * jax.random.normal(ks[7], (C_O,), dtype=jnp.float32),
        "output_w": jax.random.normal(ks[8], (C_O, C_O, F), dtype=jnp.float32) / C_O,
        "output_b": 0.1 * jax.random.normal(ks[9], (F,), dtype=jnp.float32),
    }

    out = outer_product_mean(msa_act, msa_mask, params,
                             row_tile=256, left_res_tile=8, right_res_tile=128)
    out = jax.block_until_ready(out)

    ref = _reference_opm(msa_act, msa_mask, params)
    assert out.shape == (R, R, F), out.shape
    max_err = float(jnp.max(jnp.abs(out - ref)))
    assert jnp.allclose(out, ref, atol=2e-3, rtol=2e-3), max_err

    print("KERNEL_OK")
</pallas_src>

<mosaic_0001>
module attributes {stable_mosaic.version = 11 : i64} {
  func.func @_ln_proj_kernel(%arg0: i32, %arg1: memref<256x64xf32, #tpu.memory_space<vmem>>, %arg2: memref<256x1xf32, #tpu.memory_space<vmem>>, %arg3: memref<64x32xf32, #tpu.memory_space<vmem>>, %arg4: memref<1x32xf32, #tpu.memory_space<vmem>>, %arg5: memref<64x32xf32, #tpu.memory_space<vmem>>, %arg6: memref<1x32xf32, #tpu.memory_space<vmem>>, %arg7: memref<256x32xf32, #tpu.memory_space<vmem>>, %arg8: memref<256x32xf32, #tpu.memory_space<vmem>>) attributes {dimension_semantics = [#tpu.dimension_semantics<parallel>], iteration_bounds = array<i64: 2>, scalar_prefetch = 0 : i64, scratch_operands = 0 : i64, tpu.core_type = #tpu.core_type<tc>, window_params = [{transform_indices = @transform_0, window_bounds = array<i64: 256, 64>}, {transform_indices = @transform_1, window_bounds = array<i64: 256, 1>}, {pipeline_mode = #tpu.pipeline_mode<synchronous>, transform_indices = @transform_2, window_bounds = array<i64: 64, 32>}, {pipeline_mode = #tpu.pipeline_mode<synchronous>, transform_indices = @transform_3, window_bounds = array<i64: 1, 32>}, {pipeline_mode = #tpu.pipeline_mode<synchronous>, transform_indices = @transform_4, window_bounds = array<i64: 64, 32>}, {pipeline_mode = #tpu.pipeline_mode<synchronous>, transform_indices = @transform_5, window_bounds = array<i64: 1, 32>}, {transform_indices = @transform_6, window_bounds = array<i64: 256, 32>}, {transform_indices = @transform_7, window_bounds = array<i64: 256, 32>}]} {
    %c0 = arith.constant 0 : index
    %c0_0 = arith.constant 0 : index
    %0 = vector.load %arg1[%c0, %c0_0] : memref<256x64xf32, #tpu.memory_space<vmem>>, vector<256x64xf32>
    %cst = arith.constant dense<0.000000e+00> : vector<256xf32>
    %1 = vector.multi_reduction <add>, %0, %cst [1] : vector<256x64xf32> to vector<256xf32>
    %2 = vector.shape_cast %1 : vector<256xf32> to vector<256x1xf32>
    %cst_1 = arith.constant 6.400000e+01 : f32
    %3 = vector.broadcast %cst_1 : f32 to vector<256x1xf32>
    %4 = arith.divf %2, %3 : vector<256x1xf32>
    %5 = arith.mulf %0, %0 : vector<256x64xf32>
    %cst_2 = arith.constant dense<0.000000e+00> : vector<256xf32>
    %6 = vector.multi_reduction <add>, %5, %cst_2 [1] : vector<256x64xf32> to vector<256xf32>
    %7 = vector.shape_cast %6 : vector<256xf32> to vector<256x1xf32>
    %cst_3 = arith.constant 6.400000e+01 : f32
    %8 = vector.broadcast %cst_3 : f32 to vector<256x1xf32>
    %9 = arith.divf %7, %8 : vector<256x1xf32>
    %10 = arith.mulf %4, %4 : vector<256x1xf32>
    %11 = arith.subf %9, %10 : vector<256x1xf32>
    %12 = vector.broadcast %4 : vector<256x1xf32> to vector<256x64xf32>
    %13 = arith.subf %0, %12 : vector<256x64xf32>
    %cst_4 = arith.constant 9.99999974E-6 : f32
    %14 = vector.broadcast %cst_4 : f32 to vector<256x1xf32>
    %15 = arith.addf %11, %14 : vector<256x1xf32>
    %16 = math.rsqrt %15 : vector<256x1xf32>
    %17 = vector.broadcast %16 : vector<256x1xf32> to vector<256x64xf32>
    %18 = arith.mulf %13, %17 : vector<256x64xf32>
    %c0_5 = arith.constant 0 : index
    %c0_6 = arith.constant 0 : index
    %19 = vector.load %arg2[%c0_5, %c0_6] : memref<256x1xf32, #tpu.memory_space<vmem>>, vector<256x1xf32>
    %c0_7 = arith.constant 0 : index
    %c0_8 = arith.constant 0 : index
    %20 = vector.load %arg3[%c0_7, %c0_8] : memref<64x32xf32, #tpu.memory_space<vmem>>, vector<64x32xf32>
    %cst_9 = arith.constant dense<0.000000e+00> : vector<256x32xf32>
    %21 = tpu.matmul %18, %20, %cst_9 {dimension_numbers = #tpu.dot_dimension_numbers<[1], [0], [0], [1], [0, 0, 1, 1], [], []>} : vector<256x64xf32>, vector<64x32xf32>, vector<256x32xf32> -> vector<256x32xf32>
    %c0_10 = arith.constant 0 : index
    %c0_11 = arith.constant 0 : index
    %22 = vector.load %arg4[%c0_10, %c0_11] : memref<1x32xf32, #tpu.memory_space<vmem>>, vector<1x32xf32>
    %23 = vector.broadcast %22 : vector<1x32xf32> to vector<256x32xf32>
    %24 = arith.addf %21, %23 : vector<256x32xf32>
    %c0_12 = arith.constant 0 : index
    %c0_13 = arith.constant 0 : index
    %25 = vector.load %arg5[%c0_12, %c0_13] : memref<64x32xf32, #tpu.memory_space<vmem>>, vector<64x32xf32>
    %cst_14 = arith.constant dense<0.000000e+00> : vector<256x32xf32>
    %26 = tpu.matmul %18, %25, %cst_14 {dimension_numbers = #tpu.dot_dimension_numbers<[1], [0], [0], [1], [0, 0, 1, 1], [], []>} : vector<256x64xf32>, vector<64x32xf32>, vector<256x32xf32> -> vector<256x32xf32>
    %c0_15 = arith.constant 0 : index
    %c0_16 = arith.constant 0 : index
    %27 = vector.load %arg6[%c0_15, %c0_16] : memref<1x32xf32, #tpu.memory_space<vmem>>, vector<1x32xf32>
    %28 = vector.broadcast %27 : vector<1x32xf32> to vector<256x32xf32>
    %29 = arith.addf %26, %28 : vector<256x32xf32>
    %30 = vector.broadcast %19 : vector<256x1xf32> to vector<256x32xf32>
    %31 = arith.mulf %24, %30 : vector<256x32xf32>
    %c0_17 = arith.constant 0 : index
    %c0_18 = arith.constant 0 : index
    %32 = vector.load %arg7[%c0_17, %c0_18] : memref<256x32xf32, #tpu.memory_space<vmem>>, vector<256x32xf32>
    tpu.vector_store %arg7[%c0_17, %c0_18], %31 {strides = array<i32>} : memref<256x32xf32, #tpu.memory_space<vmem>>, vector<256x32xf32>,
    %33 = vector.broadcast %19 : vector<256x1xf32> to vector<256x32xf32>
    %34 = arith.mulf %29, %33 : vector<256x32xf32>
    %c0_19 = arith.constant 0 : index
    %c0_20 = arith.constant 0 : index
    %35 = vector.load %arg8[%c0_19, %c0_20] : memref<256x32xf32, #tpu.memory_space<vmem>>, vector<256x32xf32>
    tpu.vector_store %arg8[%c0_19, %c0_20], %34 {strides = array<i32>} : memref<256x32xf32, #tpu.memory_space<vmem>>, vector<256x32xf32>,
    return
  }
  func.func @transform_0(%arg0: i32) -> (i32, i32) {
    %c0_i32 = arith.constant 0 : i32
    %c0_i32_0 = arith.constant 0 : i32
    return %arg0, %c0_i32 : i32, i32
  }
  func.func @transform_1(%arg0: i32) -> (i32, i32) {
    %c0_i32 = arith.constant 0 : i32
    %c0_i32_0 = arith.constant 0 : i32
    return %arg0, %c0_i32 : i32, i32
  }
  func.func @transform_2(%arg0: i32) -> (i32, i32) {
    %c0_i32 = arith.constant 0 : i32
    %c0_i32_0 = arith.constant 0 : i32
    %c0_i32_1 = arith.constant 0 : i32
    return %c0_i32, %c0_i32_0 : i32, i32
  }
  func.func @transform_3(%arg0: i32) -> (i32, i32) {
    %c0_i32 = arith.constant 0 : i32
    %c0_i32_0 = arith.constant 0 : i32
    %c0_i32_1 = arith.constant 0 : i32
    return %c0_i32, %c0_i32_0 : i32, i32
  }
  func.func @transform_4(%arg0: i32) -> (i32, i32) {
    %c0_i32 = arith.constant 0 : i32
    %c0_i32_0 = arith.constant 0 : i32
    %c0_i32_1 = arith.constant 0 : i32
    return %c0_i32, %c0_i32_0 : i32, i32
  }
  func.func @transform_5(%arg0: i32) -> (i32, i32) {
    %c0_i32 = arith.constant 0 : i32
    %c0_i32_0 = arith.constant 0 : i32
    %c0_i32_1 = arith.constant 0 : i32
    return %c0_i32, %c0_i32_0 : i32, i32
  }
  func.func @transform_6(%arg0: i32) -> (i32, i32) {
    %c0_i32 = arith.constant 0 : i32
    %c0_i32_0 = arith.constant 0 : i32
    return %arg0, %c0_i32 : i32, i32
  }
  func.func @transform_7(%arg0: i32) -> (i32, i32) {
    %c0_i32 = arith.constant 0 : i32
    %c0_i32_0 = arith.constant 0 : i32
    return %arg0, %c0_i32 : i32, i32
  }
}

</mosaic_0001>

<bundles_post_ra>
// kernel: tpu_custom_call.1
= control target key start
LH: loop header
LB: loop body
LE: loop exit
PB: predicated region body
PF: predicated region fallthrough
CT: control target
= control target key end

     0   :  { %s2276_s24 = smov 0   ;;  %s3082_s0 = inlined_call_operand.vmem [shape: f32[512,64], index: 0, kind: input, shape index: {}]   ;;  %s3083_s1 = inlined_call_operand.vmem [shape: f32[512,1], index: 1, kind: input, shape index: {}]   ;;  %s3084_s2 = inlined_call_operand.vmem [shape: f32[64,32], index: 2, kind: input, shape index: {}]   ;;  %s3085_s3 = inlined_call_operand.vmem [shape: f32[1,32], index: 3, kind: input, shape index: {}]   ;;  %s3086_s4 = inlined_call_operand.vmem [shape: f32[64,32], index: 4, kind: input, shape index: {}]   ;;  %s3087_s5 = inlined_call_operand.vmem [shape: f32[1,32], index: 5, kind: input, shape index: {}]   ;;  %s3088_s6 = inlined_call_operand.vmem [shape: f32[512,32], index: 6, kind: output, shape index: {0}]   ;;  %s3089_s7 = inlined_call_operand.vmem [shape: f32[512,32], index: 7, kind: output, shape index: {1}]  }
   0x1 LB: > { %s1831_s25 = sadd.s32 4294967295, %s2233_s24   ;;  %p1835_p0 = scmp.ge.s32.totalorder %s2233_s24, 1  ;;  %s2233_s24 = sphi %s2276_s24, %s18_s24  }
   0x2   : > { %p252_p1 = scmp.lt.s32.totalorder %s2233_s24, 3 }
   0x4   : > { %p253_p2 = pnand %p1835_p0, %p252_p1 }
   0x5   : > { %s1836_s26 = sshll.u32 (!%p253_p2), %s1831_s25, 5  ;;  %vm350_vm0 = vcmask (!%p253_p2), 523264   ;;  %v864_v30 = vld [vmem:[%s3084_s2] sm:$0xff] (!%p253_p2)  ;;  %v865_v31 = vld [vmem:[%s3084_s2 + $0x8] sm:$0xff] (!%p253_p2)  ;;  %v866_v40 = vld [vmem:[%s3084_s2 + $0x10] sm:$0xff] (!%p253_p2)  ;;  %vm1632_vm1 = vcmask (!%p253_p2), 261120  }
   0x6   : > { %256 = sbr.rel (%p253_p2) target bundleno = 523 (0x20b), region = 44  ;;  %p295_p3 = scmp.lt.s32.totalorder (!%p253_p2), %s1836_s26, 63  ;;  %v1200_v32 = vld [vmem:[%s3086_s4] sm:$0xff] (!%p253_p2)  ;;  %v2120_v33 = vpack.c.bf16 (!%p253_p2), %v865_v31, %v864_v30  ;;  %v1201_v34 = vld [vmem:[%s3086_s4 + $0x8] sm:$0xff] (!%p253_p2)  ;;  %v867_v41 = vld [vmem:[%s3084_s2 + $0x18] sm:$0xff] (!%p253_p2) }
   0x7   : > { %v2136_v35 = vpack.c.bf16 (!%p253_p2), %v1201_v34, %v1200_v32  ;;  %v1202_v42 = vld [vmem:[%s3086_s4 + $0x10] sm:$0xff] (!%p253_p2)  ;;  %v2124_v44 = vpack.c.bf16 (!%p253_p2), %v867_v41, %v866_v40  ;;  %v1203_v45 = vld [vmem:[%s3086_s4 + $0x18] sm:$0xff] (!%p253_p2)  ;;  %v868_v50 = vld [vmem:[%s3084_s2 + $0x20] sm:$0xff] (!%p253_p2) }
   0x8   : > { %2121 = vmatprep.subr.bf16.mxu0 (!%p253_p2), %v2120_v33  ;;  %v2140_v49 = vpack.c.bf16 (!%p253_p2), %v1203_v45, %v1202_v42  ;;  %v869_v51 = vld [vmem:[%s3084_s2 + $0x28] sm:$0xff] (!%p253_p2)  ;;  %v1204_v52 = vld [vmem:[%s3086_s4 + $0x20] sm:$0xff] (!%p253_p2)  ;;  %v870_v60 = vld [vmem:[%s3084_s2 + $0x30] sm:$0xff] (!%p253_p2) }
   0x9   : > { %2137 = vmatprep.subr.bf16.mxu1 (!%p253_p2), %v2136_v35  ;;  %2123 = vmatpush3.bf16.msra.mxu0 (!%p253_p2), %v2120_v33  ;;  %v2128_v53 = vpack.c.bf16 (!%p253_p2), %v869_v51, %v868_v50  ;;  %v1205_v54 = vld [vmem:[%s3086_s4 + $0x28] sm:$0xff] (!%p253_p2)  ;;  %v871_v61 = vld [vmem:[%s3084_s2 + $0x38] sm:$0xff] (!%p253_p2)  ;;  %v1206_v62 = vld [vmem:[%s3086_s4 + $0x30] sm:$0xff] (!%p253_p2) }
   0xa   : > { %2139 = vmatpush3.bf16.msra.mxu1 (!%p253_p2), %v2136_v35  ;;  %2125 = vmatprep.subr.bf16.mxu0 (!%p253_p2), %v2124_v44  ;;  %v2144_v58 = vpack.c.bf16 (!%p253_p2), %v1205_v54, %v1204_v52 }
   0xb   : > { %2141 = vmatprep.subr.bf16.mxu1 (!%p253_p2), %v2140_v49 }
   0xd   : > { %s3091_s26 = smov (!%p295_p3, %s1836_s26), 63  ;;  %2127 = vmatpush3.bf16.msra.mxu0 %v2124_v44 }
   0xe   : > { %s2284_s27 = sshll.u32 %s3091_s26, 3  ;;  %2143 = vmatpush3.bf16.msra.mxu1 %v2140_v49  ;;  %2129 = vmatprep.subr.bf16.mxu0 %v2128_v53 }
   0xf   : > { %s2290_s30 = scalar_lea.vmem %s3082_s0, %s2284_s27  ;;  %2145 = vmatprep.subr.bf16.mxu1 %v2144_v58  ;;  %s2600_s21 = scalar_lea.vmem %s3083_s1, %s2284_s27 }
  0x10   : > { %v2293_v0 = vld [vmem:[%s2290_s30 + $0x18] sm:$0xff]  ;;  %v2296_v1 = vld [vmem:[%s2290_s30] sm:$0xff]  ;;  %v2299_v2 = vld [vmem:[%s2290_s30 + $0x8] sm:$0xff]  ;;  %s2881_s8 = scalar_lea.vmem %s3088_s6, %s2284_s27  ;;  %s2887_s11 = scalar_lea.vmem %s3089_s7, %s2284_s27 }
  0x11   : > { %v360_v3 = vsel %vm350_vm0, %v2293_v0, 0.0  ;;  %v351_v4 = vsel %vm350_vm0, %v2296_v1, 0.0  ;;  %v480_v5 = vmul.f32 %v2296_v1, %v2296_v1  ;;  %v354_v7 = vsel %vm350_vm0, %v2299_v2, 0.0  ;;  %v2313_v9 = vld [vmem:[%s2290_s30 + $0x10] sm:$0xff]  ;;  %v2325_v16 = vld [vmem:[%s2290_s30 + $0x28] sm:$0xff]  ;;  %v2328_v17 = vld [vmem:[%s2290_s30 + $0x20] sm:$0xff]  ;;  %2131 = vmatpush3.bf16.msra.mxu0 %v2128_v53 }
  0x12   : > { %361 = vadd.xlane.f32.xlu1 %v360_v3  ;;  %352 = vadd.xlane.f32.xlu0 %v351_v4  ;;  %v481_v8 = vmul.f32 %v2299_v2, %v2299_v2  ;;  %v357_v11 = vsel %vm350_vm0, %v2313_v9, 0.0  ;;  %v483_v12 = vmul.f32 %v2293_v0, %v2293_v0  ;;  %v482_v13 = vmul.f32 %v2313_v9, %v2313_v9  ;;  %v2341_v24 = vld [vmem:[%s2290_s30 + $0x38] sm:$0xff]  ;;  %v2344_v25 = vld [vmem:[%s2290_s30 + $0x30] sm:$0xff]  ;;  %v2369_v38 = vld [vmem:[%s2290_s30 + $0x48] sm:$0xff] }
  0x13   : > { %v512_v6 = vsel %vm350_vm0, %v480_v5, 0.0  ;;  %v366_v18 = vsel %vm350_vm0, %v2325_v16, 0.0  ;;  %v363_v19 = vsel %vm350_vm0, %v2328_v17, 0.0  ;;  %v485_v20 = vmul.f32 %v2325_v16, %v2325_v16  ;;  %v2372_v39 = vld [vmem:[%s2290_s30 + $0x40] sm:$0xff]  ;;  %v2409_v57 = vld [vmem:[%s2290_s30 + $0x58] sm:$0xff]  ;;  %v2412_v59 = vld [vmem:[%s2290_s30 + $0x50] sm:$0xff]  ;;  %2147 = vmatpush3.bf16.msra.mxu1 %v2144_v58 }
  0x14   : > { %v515_v10 = vsel %vm350_vm0, %v481_v8, 0.0  ;;  %v521_v14 = vsel %vm350_vm0, %v483_v12, 0.0  ;;  %v518_v15 = vsel %vm350_vm0, %v482_v13, 0.0  ;;  %v484_v21 = vmul.f32 %v2328_v17, %v2328_v17  ;;  %v1207_v4 = vld [vmem:[%s3086_s4 + $0x38] sm:$0xff]  ;;  %v2437_v12 = vld [vmem:[%s2290_s30 + $0x68] sm:$0xff]  ;;  %v2440_v13 = vld [vmem:[%s2290_s30 + $0x60] sm:$0xff] }
  0x15   : > { %v527_v22 = vsel %vm350_vm0, %v485_v20, 0.0  ;;  %v372_v26 = vsel %vm350_vm0, %v2341_v24, 0.0  ;;  %v369_v27 = vsel %vm350_vm0, %v2344_v25, 0.0  ;;  %v487_v28 = vmul.f32 %v2341_v24, %v2341_v24  ;;  %v2469_v32 = vld [vmem:[%s2290_s30 + $0x88] sm:$0xff]  ;;  %v2472_v33 = vld [vmem:[%s2290_s30 + $0x80] sm:$0xff]  ;;  %v2485_v42 = vld [vmem:[%s2290_s30 + $0x98] sm:$0xff] }
  0x16   : > { %513 = vadd.xlane.f32.xlu1 %v512_v6  ;;  %355 = vadd.xlane.f32.xlu0 %v354_v7  ;;  %v524_v23 = vsel %vm350_vm0, %v484_v21, 0.0  ;;  %v486_v29 = vmul.f32 %v2344_v25, %v2344_v25  ;;  %v378_v43 = vsel %vm350_vm0, %v2369_v38, 0.0  ;;  %v375_v46 = vsel %vm350_vm0, %v2372_v39, 0.0  ;;  %v2501_v50 = vld [vmem:[%s2290_s30 + $0xa8] sm:$0xff]  ;;  %v2504_v51 = vld [vmem:[%s2290_s30 + $0xa0] sm:$0xff] }
  0x17   : > { %v533_v36 = vsel %vm350_vm0, %v487_v28, 0.0  ;;  %v489_v47 = vmul.f32 %v2369_v38, %v2369_v38  ;;  %v488_v48 = vmul.f32 %v2372_v39, %v2372_v39  ;;  %v384_v63 = vsel %vm350_vm0, %v2409_v57, 0.0 }
  0x18   : > { %v530_v37 = vsel %vm350_vm0, %v486_v29, 0.0  ;;  %v2132_v3 = vpack.c.bf16 %v871_v61, %v870_v60  ;;  %v381_v5 = vsel %vm350_vm0, %v2412_v59, 0.0  ;;  %v491_v6 = vmul.f32 %v2409_v57, %v2409_v57  ;;  %v2517_v60 = vld [vmem:[%s2290_s30 + $0xb8] sm:$0xff]  ;;  %v2520_v61 = vld [vmem:[%s2290_s30 + $0xb0] sm:$0xff] }
  0x19   : > { %v539_v55 = vsel %vm350_vm0, %v489_v47, 0.0  ;;  %v536_v56 = vsel %vm350_vm0, %v488_v48, 0.0  ;;  %v490_v7 = vmul.f32 %v2412_v59, %v2412_v59  ;;  %v2148_v8 = vpack.c.bf16 %v1207_v4, %v1206_v62 }
  0x1a   : > { %516 = vadd.xlane.f32.xlu1 %v515_v10  ;;  %358 = vadd.xlane.f32.xlu0 %v357_v11  ;;  %v545_v10 = vsel %vm350_vm0, %v491_v6, 0.0  ;;  %v402_v34 = vsel %vm350_vm0, %v2469_v32, 0.0  ;;  %v399_v35 = vsel %vm350_vm0, %v2472_v33, 0.0  ;;  %v408_v44 = vsel %vm350_vm0, %v2485_v42, 0.0 }
  0x1b   : > { %2133 = vmatprep.subr.bf16.mxu0 %v2132_v3  ;;  %2149 = vmatprep.subr.bf16.mxu1 %v2148_v8  ;;  %v542_v11 = vsel %vm350_vm0, %v490_v7, 0.0  ;;  %v414_v52 = vsel %vm350_vm0, %v2501_v50, 0.0  ;;  %v411_v53 = vsel %vm350_vm0, %v2504_v51, 0.0  ;;  %v501_v54 = vmul.f32 %v2501_v50, %v2501_v50  ;;  %v2533_v7 = vld [vmem:[%s2290_s30 + $0xc8] sm:$0xff] }
  0x1c   : > { %2135 = vmatpush3.bf16.msra.mxu0 %v2132_v3  ;;  %2151 = vmatpush3.bf16.msra.mxu1 %v2148_v8  ;;  %v420_v62 = vsel %vm350_vm0, %v2517_v60, 0.0  ;;  %v503_v3 = vmul.f32 %v2517_v60, %v2517_v60  ;;  %v502_v4 = vmul.f32 %v2520_v61, %v2520_v61  ;;  %v2536_v8 = vld [vmem:[%s2290_s30 + $0xc0] sm:$0xff] }
  0x1e   : > { %522 = vadd.xlane.f32.xlu1 %v521_v14  ;;  %519 = vadd.xlane.f32.xlu0 %v518_v15  ;;  %v390_v14 = vsel %vm350_vm0, %v2437_v12, 0.0  ;;  %v387_v15 = vsel %vm350_vm0, %v2440_v13, 0.0  ;;  %v578_v6 = vsel %vm350_vm0, %v502_v4, 0.0  ;;  %v834_v4 = vld [vmem:[%s2600_s21 + $0x10] sm:$0xff] }
  0x22   : > { %367 = vadd.xlane.f32.xlu1 %v366_v18  ;;  %364 = vadd.xlane.f32.xlu0 %v363_v19  ;;  %v493_v18 = vmul.f32 %v2437_v12, %v2437_v12  ;;  %v492_v19 = vmul.f32 %v2440_v13, %v2440_v13 }
  0x24   : > { %v551_v20 = vsel %vm350_vm0, %v493_v18, 0.0  ;;  %v548_v21 = vsel %vm350_vm0, %v492_v19, 0.0 }
  0x26   : > { %528 = vadd.xlane.f32.xlu1 %v527_v22  ;;  %525 = vadd.xlane.f32.xlu0 %v524_v23  ;;  %v2453_v22 = vld [vmem:[%s2290_s30 + $0x78] sm:$0xff]  ;;  %v2456_v23 = vld [vmem:[%s2290_s30 + $0x70] sm:$0xff] }
  0x27   : > { %v495_v28 = vmul.f32 %v2453_v22, %v2453_v22  ;;  %v494_v29 = vmul.f32 %v2456_v23, %v2456_v23 }
  0x29   : > { %v557_v30 = vsel %vm350_vm0, %v495_v28, 0.0  ;;  %v554_v31 = vsel %vm350_vm0, %v494_v29, 0.0 }
  0x2a   : > { %373 = vadd.xlane.f32.xlu1 %v372_v26  ;;  %370 = vadd.xlane.f32.xlu0 %v369_v27  ;;  %v396_v26 = vsel %vm350_vm0, %v2453_v22, 0.0  ;;  %v393_v27 = vsel %vm350_vm0, %v2456_v23, 0.0 }
  0x2e   : > { %534 = vadd.xlane.f32.xlu1 %v533_v36  ;;  %531 = vadd.xlane.f32.xlu0 %v530_v37  ;;  %v497_v36 = vmul.f32 %v2469_v32, %v2469_v32  ;;  %v496_v37 = vmul.f32 %v2472_v33, %v2472_v33 }
  0x30   : > { %v563_v40 = vsel %vm350_vm0, %v497_v36, 0.0  ;;  %v560_v41 = vsel %vm350_vm0, %v496_v37, 0.0  ;;  %v2568_v36 = vld [vmem:[%s2290_s30 + $0xe0] sm:$0xff] }
  0x32   : > { %379 = vadd.xlane.f32.xlu1 %v378_v43  ;;  %376 = vadd.xlane.f32.xlu0 %v375_v46  ;;  %v2488_v43 = vld [vmem:[%s2290_s30 + $0x90] sm:$0xff]  ;;  %v499_v46 = vmul.f32 %v2485_v42, %v2485_v42 }
  0x33   : > { %v405_v45 = vsel %vm350_vm0, %v2488_v43, 0.0  ;;  %v498_v47 = vmul.f32 %v2488_v43, %v2488_v43 }
  0x34   : > { %v569_v48 = vsel %vm350_vm0, %v499_v46, 0.0 }
  0x35   : > { %v566_v49 = vsel %vm350_vm0, %v498_v47, 0.0  ;;  %v2581_v47 = vld [vmem:[%s2290_s30 + $0xf8] sm:$0xff] }
  0x36   : > { %540 = vadd.xlane.f32.xlu1 %v539_v55  ;;  %537 = vadd.xlane.f32.xlu0 %v536_v56  ;;  %v500_v55 = vmul.f32 %v2504_v51, %v2504_v51  ;;  %v575_v56 = vsel %vm350_vm0, %v501_v54, 0.0 }
  0x38   : > { %v572_v58 = vsel %vm350_vm0, %v500_v55, 0.0 }
  0x3a   : > { %385 = vadd.xlane.f32.xlu1 %v384_v63  ;;  %382 = vadd.xlane.f32.xlu0 %v381_v5  ;;  %v417_v63 = vsel %vm350_vm0, %v2520_v61, 0.0  ;;  %v581_v5 = vsel %vm350_vm0, %v503_v3, 0.0 }
  0x3e   : > { %546 = vadd.xlane.f32.xlu1 %v545_v10  ;;  %543 = vadd.xlane.f32.xlu0 %v542_v11  ;;  %v426_v10 = vsel %vm350_vm0, %v2533_v7, 0.0  ;;  %v423_v11 = vsel %vm350_vm0, %v2536_v8, 0.0 }
  0x42   : > { %391 = vadd.xlane.f32.xlu1 %v390_v14  ;;  %388 = vadd.xlane.f32.xlu0 %v387_v15  ;;  %v505_v14 = vmul.f32 %v2533_v7, %v2533_v7  ;;  %v504_v15 = vmul.f32 %v2536_v8, %v2536_v8 }
  0x44   : > { %v587_v18 = vsel %vm350_vm0, %v505_v14, 0.0  ;;  %v584_v19 = vsel %vm350_vm0, %v504_v15, 0.0 }
  0x46   : > { %552 = vadd.xlane.f32.xlu1 %v551_v20  ;;  %549 = vadd.xlane.f32.xlu0 %v548_v21  ;;  %v2549_v20 = vld [vmem:[%s2290_s30 + $0xd8] sm:$0xff]  ;;  %v2552_v21 = vld [vmem:[%s2290_s30 + $0xd0] sm:$0xff] }
  0x47   : > { %v507_v28 = vmul.f32 %v2549_v20, %v2549_v20  ;;  %v506_v29 = vmul.f32 %v2552_v21, %v2552_v21 }
  0x4a   : > { %397 = vadd.xlane.f32.xlu1 %v396_v26  ;;  %394 = vadd.xlane.f32.xlu0 %v393_v27  ;;  %v432_v26 = vsel %vm350_vm0, %v2549_v20, 0.0  ;;  %v429_v27 = vsel %vm350_vm0, %v2552_v21, 0.0 }
  0x4e   : > { %558 = vadd.xlane.f32.xlu1 %v557_v30  ;;  %555 = vadd.xlane.f32.xlu0 %v554_v31  ;;  %v2235_v30 = vmov 0   ;;  %v593_v31 = vsel %vm350_vm0, %v507_v28, 0.0 }
  0x4f   : > { %2162 = vset.pattern.permute.xlu1 %v2235_v30  ;;  %2161 = vset.pattern.permute.xlu0 %v2235_v30 }
  0x52   : > { %403 = vadd.xlane.f32.xlu1 %v402_v34  ;;  %400 = vadd.xlane.f32.xlu0 %v399_v35  ;;  %v590_v34 = vsel %vm350_vm0, %v506_v29, 0.0  ;;  %v2565_v35 = vld [vmem:[%s2290_s30 + $0xe8] sm:$0xff] }
  0x53   : > { %v438_v37 = vsel %vm350_vm0, %v2565_v35, 0.0 }
  0x56   : > { %564 = vadd.xlane.f32.xlu1 %v563_v40  ;;  %561 = vadd.xlane.f32.xlu0 %v560_v41  ;;  %v435_v40 = vsel %vm350_vm0, %v2568_v36, 0.0  ;;  %v509_v41 = vmul.f32 %v2565_v35, %v2565_v35 }
  0x5a   : > { %409 = vadd.xlane.f32.xlu1 %v408_v44  ;;  %406 = vadd.xlane.f32.xlu0 %v405_v45  ;;  %v508_v44 = vmul.f32 %v2568_v36, %v2568_v36  ;;  %v599_v45 = vsel %vm350_vm0, %v509_v41, 0.0 }
  0x5c   : > { %v596_v46 = vsel %vm350_vm0, %v508_v44, 0.0 }
  0x5e   : > { %570 = vadd.xlane.f32.xlu1 %v569_v48  ;;  %567 = vadd.xlane.f32.xlu0 %v566_v49  ;;  %v2584_v48 = vld [vmem:[%s2290_s30 + $0xf0] sm:$0xff]  ;;  %v444_v49 = vsel %vm350_vm0, %v2581_v47, 0.0 }
  0x5f   : > { %v510_v54 = vmul.f32 %v2584_v48, %v2584_v48 }
  0x62   : > { %415 = vadd.xlane.f32.xlu1 %v414_v52  ;;  %412 = vadd.xlane.f32.xlu0 %v411_v53  ;;  %v441_v52 = vsel %vm350_vm0, %v2584_v48, 0.0  ;;  %v511_v53 = vmul.f32 %v2581_v47, %v2581_v47 }
  0x64   : > { %v605_v55 = vsel %vm350_vm0, %v511_v53, 0.0 }
  0x66   : > { %576 = vadd.xlane.f32.xlu1 %v575_v56  ;;  %573 = vadd.xlane.f32.xlu0 %v572_v58  ;;  %v602_v56 = vsel %vm350_vm0, %v510_v54, 0.0  ;;  %v833_v58 = vld [vmem:[%s2600_s21 + $0x8] sm:$0xff] }
  0x6a   : > { %421 = vadd.xlane.f32.xlu1 %v420_v62  ;;  %418 = vadd.xlane.f32.xlu0 %v417_v63 }
  0x6e   : > { %582 = vadd.xlane.f32.xlu1 %v581_v5  ;;  %579 = vadd.xlane.f32.xlu0 %v578_v6  ;;  %v832_v5 = vld [vmem:[%s2600_s21] sm:$0xff] }
  0x72   : > { %427 = vadd.xlane.f32.xlu1 %v426_v10  ;;  %424 = vadd.xlane.f32.xlu0 %v423_v11 }
  0x76   : > { %588 = vadd.xlane.f32.xlu1 %v587_v18  ;;  %585 = vadd.xlane.f32.xlu0 %v584_v19  ;;  %v835_v18 = vld [vmem:[%s2600_s21 + $0x18] sm:$0xff] }
  0x7a   : > { %433 = vadd.xlane.f32.xlu1 %v432_v26  ;;  %430 = vadd.xlane.f32.xlu0 %v429_v27 }
  0x7e   : > { %594 = vadd.xlane.f32.xlu1 %v593_v31  ;;  %591 = vadd.xlane.f32.xlu0 %v590_v34 }
  0x82   : > { %439 = vadd.xlane.f32.xlu1 %v438_v37  ;;  %436 = vadd.xlane.f32.xlu0 %v435_v40  ;;  %v836_v37 = vld [vmem:[%s2600_s21 + $0x20] sm:$0xff]  ;;  %v841_v40 = vld [vmem:[%s2600_s21 + $0x48] sm:$0xff] }
  0x86   : > { %600 = vadd.xlane.f32.xlu1 %v599_v45  ;;  %597 = vadd.xlane.f32.xlu0 %v596_v46 }
  0x8a   : > { %445 = vadd.xlane.f32.xlu1 %v444_v49  ;;  %442 = vadd.xlane.f32.xlu0 %v441_v52  ;;  %v843_v49 = vld [vmem:[%s2600_s21 + $0x58] sm:$0xff] }
  0x8e   : > { %606 = vadd.xlane.f32.xlu1 %v605_v55  ;;  %603 = vadd.xlane.f32.xlu0 %v602_v56  ;;  %v837_v56 = vld [vmem:[%s2600_s21 + $0x28] sm:$0xff] }
  0x9f   : > { %v362_v62 = vpop.xlane.xlu1 %361  ;;  %v353_v63 = vpop.xlane.xlu0 %352  ;;  %1447 = vperm.xlu1 %2162, %v833_v58  }
  0xa0   : > { %v448_v3 = vmul.f32 0.015625, %v353_v63  ;;  %v2608_v26 = vmul.f32 0.015625, %v362_v62 }
  0xa2   : > { %v640_v11 = vmul.f32 %v448_v3, %v448_v3  ;;  %v643_v44 = vmul.f32 %v2608_v26, %v2608_v26 }
  0xa3   : > { %v514_v6 = vpop.xlane.xlu1 %513  ;;  %v356_v10 = vpop.xlane.xlu0 %355  ;;  %1452 = vperm.xlu1 %2162, %v834_v4  }
  0xa4   : > { %v608_v14 = vmul.f32 0.015625, %v514_v6  ;;  %v2605_v15 = vmul.f32 0.015625, %v356_v10  ;;  %1442 = vperm.xlu0 %2161, %v832_v5   ;;  %v838_v5 = vld [vmem:[%s2600_s21 + $0x30] sm:$0xff] }
  0xa6   : > { %v672_v19 = vsub.f32 %v608_v14, %v640_v11  ;;  %v641_v30 = vmul.f32 %v2605_v15, %v2605_v15 }
  0xa7   : > { %v517_v27 = vpop.xlane.xlu1 %516  ;;  %v359_v28 = vpop.xlane.xlu0 %358  ;;  %1457 = vperm.xlu1 %2162, %v835_v18   ;;  %v845_v18 = vld [vmem:[%s2600_s21 + $0x68] sm:$0xff] }
  0xa8   : > { %v736_v29 = vadd.f32 1e-05, %v672_v19  ;;  %v609_v31 = vmul.f32 0.015625, %v517_v27  ;;  %v2612_v34 = vmul.f32 0.015625, %v359_v28  ;;  %1487 = vperm.xlu0 %2161, %v841_v40   ;;  %v704_v27 = vsub.f32 %v2296_v1, %v448_v3 }
  0xa9   : > { %v705_v1 = vsub.f32 %v2299_v2, %v2605_v15  ;;  %v707_v15 = vsub.f32 %v2293_v0, %v2608_v26 }
  0xaa   : > { %2163 = vrsqrt.f32 %v736_v29  ;;  %v673_v41 = vsub.f32 %v609_v31, %v641_v30  ;;  %v642_v53 = vmul.f32 %v2612_v34, %v2612_v34  ;;  %v847_v30 = vld [vmem:[%s2600_s21 + $0x78] sm:$0xff] }
  0xab   : > { %v523_v45 = vpop.xlane.xlu1 %522  ;;  %v520_v46 = vpop.xlane.xlu0 %519  ;;  %1462 = vperm.xlu1 %2162, %v836_v37  }
  0xac   : > { %v737_v52 = vadd.f32 1e-05, %v673_v41  ;;  %v611_v54 = vmul.f32 0.015625, %v523_v45  ;;  %v610_v55 = vmul.f32 0.015625, %v520_v46  ;;  %1497 = vperm.xlu0 %2161, %v843_v49   ;;  %v839_v45 = vld [vmem:[%s2600_s21 + $0x38] sm:$0xff] }
  0xae   : > { %2165 = vrsqrt.f32 %v737_v52  ;;  %v675_v58 = vsub.f32 %v611_v54, %v643_v44  ;;  %v674_v62 = vsub.f32 %v610_v55, %v642_v53  ;;  %v849_v53 = vld [vmem:[%s2600_s21 + $0x88] sm:$0xff] }
  0xaf   : > { %v368_v63 = vpop.xlane.xlu1 %367  ;;  %v365_v4 = vpop.xlane.xlu0 %364  ;;  %1467 = vperm.xlu1 %2162, %v837_v56  }
  0xb0   : > { %v739_v6 = vadd.f32 1e-05, %v675_v58  ;;  %v738_v10 = vadd.f32 1e-05, %v674_v62  ;;  %v2623_v11 = vmul.f32 0.015625, %v368_v63  ;;  %v2625_v14 = vmul.f32 0.015625, %v365_v4  ;;  %1507 = vperm.xlu0 %2161, %v845_v18  }
  0xb1   : > { %v840_v4 = vld [vmem:[%s2600_s21 + $0x40] sm:$0xff] }
  0xb2   : > { %2167 = vrsqrt.f32 %v739_v6  ;;  %v645_v19 = vmul.f32 %v2623_v11, %v2623_v11  ;;  %v644_v37 = vmul.f32 %v2625_v14, %v2625_v14 }
  0xb3   : > { %2169 = vrsqrt.f32 %v738_v10  ;;  %v529_v28 = vpop.xlane.xlu1 %528  ;;  %v526_v29 = vpop.xlane.xlu0 %525  ;;  %1472 = vperm.xlu1 %2162, %v838_v5   ;;  %v851_v10 = vld [vmem:[%s2600_s21 + $0x98] sm:$0xff] }
  0xb4   : > { %v2164_v31 = vpop.eup %2163  ;;  %v613_v40 = vmul.f32 0.015625, %v529_v28  ;;  %v612_v41 = vmul.f32 0.015625, %v526_v29  ;;  %1517 = vperm.xlu0 %2161, %v847_v30  }
  0xb5   : > { %v800_v44 = vmul.f32 %v2164_v31, %v704_v27 }
  0xb6   : > { %v677_v46 = vsub.f32 %v613_v40, %v645_v19  ;;  %v676_v49 = vsub.f32 %v612_v41, %v644_v37  ;;  %v706_v19 = vsub.f32 %v2313_v9, %v2612_v34 }
  0xb7   : > { %v374_v3 = vpop.xlane.xlu1 %373  ;;  %2008 = vmatprep.mubr.msk.f32.mxu0 %vm350_vm0, %v800_v44  ;;  %2072 = vmatprep.mubr.msk.f32.mxu1 %vm350_vm0, %v800_v44  ;;  %v371_v52 = vpop.xlane.xlu0 %370  ;;  %v842_v44 = vld [vmem:[%s2600_s21 + $0x50] sm:$0xff] }
  0xb8   : > { %v2166_v54 = vpop.eup %2165  ;;  %v741_v55 = vadd.f32 1e-05, %v677_v46  ;;  %v740_v56 = vadd.f32 1e-05, %v676_v49  ;;  %v2640_v58 = vmul.f32 0.015625, %v374_v3  ;;  %v2642_v62 = vmul.f32 0.015625, %v371_v52  ;;  %1477 = vperm.xlu1 %2162, %v839_v45   ;;  %1527 = vperm.xlu0 %2161, %v849_v53  }
  0xb9   : > { %v801_v63 = vmul.f32 %v2166_v54, %v705_v1  ;;  %v853_v45 = vld [vmem:[%s2600_s21 + $0xa8] sm:$0xff]  ;;  %v709_v3 = vsub.f32 %v2325_v16, %v2623_v11  ;;  %v844_v54 = vld [vmem:[%s2600_s21 + $0x60] sm:$0xff] }
  0xba   : > { %2171 = vrsqrt.f32 %v741_v55  ;;  %v647_v2 = vmul.f32 %v2640_v58, %v2640_v58  ;;  %v646_v27 = vmul.f32 %v2642_v62, %v2642_v62  ;;  %v855_v55 = vld [vmem:[%s2600_s21 + $0xb8] sm:$0xff] }
  0xbb   : > { %2173 = vrsqrt.f32 %v740_v56  ;;  %v535_v5 = vpop.xlane.xlu1 %534  ;;  %2009 = vmatmul.mubr.msk.f32.vlgmr.msra.gmra.mrb[0].mxu0 %vm350_vm0, %v801_v63  ;;  %2073 = vmatmul.mubr.msk.f32.vlgmr.msra.gmra.mrb[0].mxu1 %vm350_vm0, %v801_v63  ;;  %v532_v6 = vpop.xlane.xlu0 %531  ;;  %v708_v63 = vsub.f32 %v2328_v17, %v2625_v14 }
  0xbc   : > { %v2168_v18 = vpop.eup %2167  ;;  %v615_v28 = vmul.f32 0.015625, %v535_v5  ;;  %v614_v29 = vmul.f32 0.015625, %v532_v6  ;;  %1482 = vperm.xlu1 %2162, %v840_v4   ;;  %1537 = vperm.xlu0 %2161, %v851_v10  }
  0xbd   : > { %v2170_v0 = vpop.eup %2169  ;;  %v803_v26 = vmul.f32 %v2168_v18, %v707_v15 }
  0xbe   : > { %v679_v30 = vsub.f32 %v615_v28, %v647_v2  ;;  %v678_v31 = vsub.f32 %v614_v29, %v646_v27  ;;  %v802_v37 = vmul.f32 %v2170_v0, %v706_v19  ;;  %v846_v27 = vld [vmem:[%s2600_s21 + $0x70] sm:$0xff]  ;;  %v857_v28 = vld [vmem:[%s2600_s21 + $0xc8] sm:$0xff] }
  0xbf   : > { %v380_v40 = vpop.xlane.xlu1 %379  ;;  %v377_v41 = vpop.xlane.xlu0 %376 }
  0xc0   : > { %v743_v46 = vadd.f32 1e-05, %v679_v30  ;;  %v742_v49 = vadd.f32 1e-05, %v678_v31  ;;  %v2658_v9 = vmul.f32 0.015625, %v380_v40  ;;  %2011 = vmatprep.mubr.msk.f32.mxu0 %vm350_vm0, %v802_v37  ;;  %2075 = vmatprep.mubr.msk.f32.mxu1 %vm350_vm0, %v802_v37  ;;  %v2662_v34 = vmul.f32 0.015625, %v377_v41 }
  0xc1   : > { %2012 = vmatmul.mubr.msk.f32.gmra.mrb[2].mxu0 %vm350_vm0, %v803_v26  ;;  %2076 = vmatmul.mubr.msk.f32.gmra.mrb[2].mxu1 %vm350_vm0, %v803_v26  ;;  %v711_v30 = vsub.f32 %v2341_v24, %v2640_v58  ;;  %v848_v40 = vld [vmem:[%s2600_s21 + $0x80] sm:$0xff]  ;;  %v859_v41 = vld [vmem:[%s2600_s21 + $0xd8] sm:$0xff] }
  0xc2   : > { %2175 = vrsqrt.f32 %v743_v46  ;;  %v649_v1 = vmul.f32 %v2658_v9, %v2658_v9  ;;  %1492 = vperm.xlu1 %2162, %v842_v44   ;;  %1547 = vperm.xlu0 %2161, %v853_v45   ;;  %v648_v4 = vmul.f32 %v2662_v34, %v2662_v34  ;;  %v710_v45 = vsub.f32 %v2344_v25, %v2642_v62 }
  0xc3   : > { %2177 = vrsqrt.f32 %v742_v49  ;;  %v541_v52 = vpop.xlane.xlu1 %540  ;;  %v538_v53 = vpop.xlane.xlu0 %537 }
  0xc4   : > { %v2172_v56 = vpop.eup %2171  ;;  %v617_v2 = vmul.f32 0.015625, %v541_v52  ;;  %v616_v15 = vmul.f32 0.015625, %v538_v53 }
  0xc5   : > { %v2174_v5 = vpop.eup %2173  ;;  %v805_v6 = vmul.f32 %v2172_v56, %v709_v3  ;;  %v850_v56 = vld [vmem:[%s2600_s21 + $0x90] sm:$0xff] }
  0xc6   : > { %v681_v10 = vsub.f32 %v617_v2, %v649_v1  ;;  %v680_v16 = vsub.f32 %v616_v15, %v648_v4  ;;  %v804_v11 = vmul.f32 %v2174_v5, %v708_v63  ;;  %1502 = vperm.xlu1 %2162, %v844_v54   ;;  %1557 = vperm.xlu0 %2161, %v855_v55   ;;  %v861_v63 = vld [vmem:[%s2600_s21 + $0xe8] sm:$0xff] }
  0xc7   : > { %v386_v18 = vpop.xlane.xlu1 %385  ;;  %v383_v19 = vpop.xlane.xlu0 %382  ;;  %v713_v5 = vsub.f32 %v2369_v38, %v2658_v9 }
  0xc8   : > { %v745_v29 = vadd.f32 1e-05, %v681_v10  ;;  %v744_v0 = vadd.f32 1e-05, %v680_v16  ;;  %v2678_v17 = vmul.f32 0.015625, %v386_v18  ;;  %2014 = vmatprep.mubr.msk.f32.mxu0 %vm350_vm0, %v804_v11  ;;  %2078 = vmatprep.mubr.msk.f32.mxu1 %vm350_vm0, %v804_v11  ;;  %v2682_v14 = vmul.f32 0.015625, %v383_v19 }
  0xc9   : > { %2015 = vmatmul.mubr.msk.f32.gmra.mrb[4].mxu0 %vm350_vm0, %v805_v6  ;;  %2079 = vmatmul.mubr.msk.f32.gmra.mrb[4].mxu1 %vm350_vm0, %v805_v6  ;;  %v852_v16 = vld [vmem:[%s2600_s21 + $0xa0] sm:$0xff]  ;;  %v863_v11 = vld [vmem:[%s2600_s21 + $0xf8] sm:$0xff]  ;;  %v712_v19 = vsub.f32 %v2372_v39, %v2662_v34 }
  0xca   : > { %2179 = vrsqrt.f32 %v745_v29  ;;  %v651_v26 = vmul.f32 %v2678_v17, %v2678_v17  ;;  %1512 = vperm.xlu1 %2162, %v846_v27   ;;  %1567 = vperm.xlu0 %2161, %v857_v28   ;;  %v650_v46 = vmul.f32 %v2682_v14, %v2682_v14 }
  0xcb   : > { %2181 = vrsqrt.f32 %v744_v0  ;;  %v547_v31 = vpop.xlane.xlu1 %546  ;;  %v544_v37 = vpop.xlane.xlu0 %543 }
  0xcc   : > { %v2176_v44 = vpop.eup %2175  ;;  %v619_v49 = vmul.f32 0.015625, %v547_v31  ;;  %v618_v1 = vmul.f32 0.015625, %v544_v37 }
  0xcd   : > { %v2178_v3 = vpop.eup %2177  ;;  %v807_v52 = vmul.f32 %v2176_v44, %v711_v30 }
  0xce   : > { %v683_v53 = vsub.f32 %v619_v49, %v651_v26  ;;  %v682_v24 = vsub.f32 %v618_v1, %v650_v46  ;;  %v806_v58 = vmul.f32 %v2178_v3, %v710_v45  ;;  %1522 = vperm.xlu1 %2162, %v848_v40   ;;  %1577 = vperm.xlu0 %2161, %v859_v41   ;;  %v854_v40 = vld [vmem:[%s2600_s21 + $0xb0] sm:$0xff]  ;;  %v856_v3 = vld [vmem:[%s2600_s21 + $0xc0] sm:$0xff] }
  0xcf   : > { %v392_v54 = vpop.xlane.xlu1 %391  ;;  %v389_v55 = vpop.xlane.xlu0 %388  ;;  %v715_v46 = vsub.f32 %v2409_v57, %v2678_v17 }
  0xd0   : > { %v747_v4 = vadd.f32 1e-05, %v683_v53  ;;  %v746_v2 = vadd.f32 1e-05, %v682_v24  ;;  %v2698_v25 = vmul.f32 0.015625, %v392_v54  ;;  %2017 = vmatprep.mubr.msk.f32.mxu0 %vm350_vm0, %v806_v58  ;;  %2081 = vmatprep.mubr.msk.f32.mxu1 %vm350_vm0, %v806_v58  ;;  %v2702_v62 = vmul.f32 0.015625, %v389_v55 }
  0xd1   : > { %2018 = vmatmul.mubr.msk.f32.gmra.mrb[6].mxu0 %vm350_vm0, %v807_v52  ;;  %2082 = vmatmul.mubr.msk.f32.gmra.mrb[6].mxu1 %vm350_vm0, %v807_v52  ;;  %v714_v53 = vsub.f32 %v2412_v59, %v2682_v14 }
  0xd2   : > { %2183 = vrsqrt.f32 %v747_v4  ;;  %v653_v15 = vmul.f32 %v2698_v25, %v2698_v25  ;;  %1532 = vperm.xlu1 %2162, %v850_v56   ;;  %1587 = vperm.xlu0 %2161, %v861_v63   ;;  %v652_v27 = vmul.f32 %v2702_v62, %v2702_v62 }
  0xd3   : > { %2185 = vrsqrt.f32 %v746_v2  ;;  %v553_v6 = vpop.xlane.xlu1 %552  ;;  %v550_v10 = vpop.xlane.xlu0 %549 }
  0xd4   : > { %v2180_v18 = vpop.eup %2179  ;;  %v621_v28 = vmul.f32 0.015625, %v553_v6  ;;  %v620_v29 = vmul.f32 0.015625, %v550_v10 }
  0xd5   : > { %v2182_v0 = vpop.eup %2181  ;;  %v809_v26 = vmul.f32 %v2180_v18, %v713_v5 }
  0xd6   : > { %v685_v30 = vsub.f32 %v621_v28, %v653_v15  ;;  %v684_v31 = vsub.f32 %v620_v29, %v652_v27  ;;  %v808_v38 = vmul.f32 %v2182_v0, %v712_v19  ;;  %1542 = vperm.xlu1 %2162, %v852_v16   ;;  %1597 = vperm.xlu0 %2161, %v863_v11   ;;  %v858_v15 = vld [vmem:[%s2600_s21 + $0xd0] sm:$0xff]  ;;  %v860_v19 = vld [vmem:[%s2600_s21 + $0xe0] sm:$0xff] }
  0xd7   : > { %v398_v9 = vpop.xlane.xlu1 %397  ;;  %v395_v37 = vpop.xlane.xlu0 %394  ;;  %v717_v16 = vsub.f32 %v2437_v12, %v2698_v25  ;;  %v716_v28 = vsub.f32 %v2440_v13, %v2702_v62 }
  0xd8   : > { %v749_v41 = vadd.f32 1e-05, %v685_v30  ;;  %v748_v44 = vadd.f32 1e-05, %v684_v31  ;;  %v2717_v45 = vmul.f32 0.015625, %v398_v9  ;;  %2020 = vmatprep.mubr.msk.f32.mxu0 %vm350_vm0, %v808_v38  ;;  %2084 = vmatprep.mubr.msk.f32.mxu1 %vm350_vm0, %v808_v38  ;;  %v2721_v39 = vmul.f32 0.015625, %v395_v37 }
  0xd9   : > { %2021 = vmatmul.mubr.msk.f32.gmra.mrb[8].mxu0 %vm350_vm0, %v809_v26  ;;  %2085 = vmatmul.mubr.msk.f32.gmra.mrb[8].mxu1 %vm350_vm0, %v809_v26 }
  0xda   : > { %2187 = vrsqrt.f32 %v749_v41  ;;  %v655_v34 = vmul.f32 %v2717_v45, %v2717_v45  ;;  %1552 = vperm.xlu1 %2162, %v854_v40   ;;  %v654_v24 = vmul.f32 %v2721_v39, %v2721_v39  ;;  %v862_v40 = vld [vmem:[%s2600_s21 + $0xf0] sm:$0xff] }
  0xdb   : > { %2189 = vrsqrt.f32 %v748_v44  ;;  %v559_v49 = vpop.xlane.xlu1 %558  ;;  %v556_v1 = vpop.xlane.xlu0 %555 }
  0xdc   : > { %v2184_v52 = vpop.eup %2183  ;;  %v623_v58 = vmul.f32 0.015625, %v559_v49  ;;  %v622_v54 = vmul.f32 0.015625, %v556_v1 }
  0xdd   : > { %v2186_v55 = vpop.eup %2185  ;;  %v811_v56 = vmul.f32 %v2184_v52, %v715_v46  ;;  %v719_v46 = vsub.f32 %v2453_v22, %v2717_v45  ;;  %v718_v52 = vsub.f32 %v2456_v23, %v2721_v39 }
  0xde   : > { %v687_v63 = vsub.f32 %v623_v58, %v655_v34  ;;  %v686_v4 = vsub.f32 %v622_v54, %v654_v24  ;;  %v810_v2 = vmul.f32 %v2186_v55, %v714_v53  ;;  %1562 = vperm.xlu1 %2162, %v856_v3  }
  0xdf   : > { %v404_v57 = vpop.xlane.xlu1 %403  ;;  %v401_v17 = vpop.xlane.xlu0 %400 }
  0xe0   : > { %v751_v5 = vadd.f32 1e-05, %v687_v63  ;;  %v750_v6 = vadd.f32 1e-05, %v686_v4  ;;  %v2735_v10 = vmul.f32 0.015625, %v404_v57  ;;  %2023 = vmatprep.mubr.msk.f32.mxu0 %vm350_vm0, %v810_v2  ;;  %2087 = vmatprep.mubr.msk.f32.mxu1 %vm350_vm0, %v810_v2  ;;  %v2739_v59 = vmul.f32 0.015625, %v401_v17 }
  0xe1   : > { %2024 = vmatmul.mubr.msk.f32.gmra.mrb[10].mxu0 %vm350_vm0, %v811_v56  ;;  %2088 = vmatmul.mubr.msk.f32.gmra.mrb[10].mxu1 %vm350_vm0, %v811_v56 }
  0xe2   : > { %2191 = vrsqrt.f32 %v751_v5  ;;  %v657_v14 = vmul.f32 %v2735_v10, %v2735_v10  ;;  %1572 = vperm.xlu1 %2162, %v858_v15   ;;  %v656_v29 = vmul.f32 %v2739_v59, %v2739_v59  ;;  %v721_v15 = vsub.f32 %v2469_v32, %v2735_v10 }
  0xe3   : > { %2193 = vrsqrt.f32 %v750_v6  ;;  %v565_v11 = vpop.xlane.xlu1 %564  ;;  %v562_v18 = vpop.xlane.xlu0 %561 }
  0xe4   : > { %v2188_v27 = vpop.eup %2187  ;;  %v625_v0 = vmul.f32 0.015625, %v565_v11  ;;  %v624_v26 = vmul.f32 0.015625, %v562_v18 }
  0xe5   : > { %v2190_v30 = vpop.eup %2189  ;;  %v813_v31 = vmul.f32 %v2188_v27, %v717_v16  ;;  %v720_v16 = vsub.f32 %v2472_v33, %v2739_v59 }
  0xe6   : > { %v689_v38 = vsub.f32 %v625_v0, %v657_v14  ;;  %v688_v9 = vsub.f32 %v624_v26, %v656_v29  ;;  %v812_v37 = vmul.f32 %v2190_v30, %v716_v28  ;;  %1582 = vperm.xlu1 %2162, %v860_v19  }
  0xe7   : > { %v410_v12 = vpop.xlane.xlu1 %409  ;;  %v407_v25 = vpop.xlane.xlu0 %406 }
  0xe8   : > { %v753_v41 = vadd.f32 1e-05, %v689_v38  ;;  %v752_v44 = vadd.f32 1e-05, %v688_v9  ;;  %v2753_v34 = vmul.f32 0.015625, %v410_v12  ;;  %2026 = vmatprep.mubr.msk.f32.mxu0 %vm350_vm0, %v812_v37  ;;  %2090 = vmatprep.mubr.msk.f32.mxu1 %vm350_vm0, %v812_v37  ;;  %v2757_v13 = vmul.f32 0.015625, %v407_v25 }
  0xe9   : > { %2027 = vmatmul.mubr.msk.f32.gmra.mrb[12].mxu0 %vm350_vm0, %v813_v31  ;;  %2091 = vmatmul.mubr.msk.f32.gmra.mrb[12].mxu1 %vm350_vm0, %v813_v31 }
  0xea   : > { %2195 = vrsqrt.f32 %v753_v41  ;;  %v659_v62 = vmul.f32 %v2753_v34, %v2753_v34  ;;  %1592 = vperm.xlu1 %2162, %v862_v40   ;;  %v658_v53 = vmul.f32 %v2757_v13, %v2757_v13  ;;  %v723_v9 = vsub.f32 %v2485_v42, %v2753_v34 }
  0xeb   : > { %2197 = vrsqrt.f32 %v752_v44  ;;  %v571_v49 = vpop.xlane.xlu1 %570  ;;  %v568_v1 = vpop.xlane.xlu0 %567  ;;  %v722_v40 = vsub.f32 %v2488_v43, %v2757_v13 }
  0xec   : > { %v2192_v3 = vpop.eup %2191  ;;  %v627_v24 = vmul.f32 0.015625, %v571_v49  ;;  %v626_v58 = vmul.f32 0.015625, %v568_v1 }
  0xed   : > { %v2194_v54 = vpop.eup %2193  ;;  %v815_v55 = vmul.f32 %v2192_v3, %v719_v46 }
  0xee   : > { %v691_v56 = vsub.f32 %v627_v24, %v659_v62  ;;  %v690_v63 = vsub.f32 %v626_v58, %v658_v53  ;;  %v814_v4 = vmul.f32 %v2194_v54, %v718_v52 }
  0xef   : > { %v416_v2 = vpop.xlane.xlu1 %415  ;;  %v413_v57 = vpop.xlane.xlu0 %412 }
  0xf0   : > { %v755_v22 = vadd.f32 1e-05, %v691_v56  ;;  %v754_v45 = vadd.f32 1e-05, %v690_v63  ;;  %v2769_v17 = vmul.f32 0.015625, %v416_v2  ;;  %2029 = vmatprep.mubr.msk.f32.mxu0 %vm350_vm0, %v814_v4  ;;  %2093 = vmatprep.mubr.msk.f32.mxu1 %vm350_vm0, %v814_v4  ;;  %v2773_v23 = vmul.f32 0.015625, %v413_v57 }
  0xf1   : > { %2030 = vmatmul.mubr.msk.f32.gmra.mrb[14].mxu0 %vm350_vm0, %v815_v55  ;;  %2094 = vmatmul.mubr.msk.f32.gmra.mrb[14].mxu1 %vm350_vm0, %v815_v55 }
  0xf2   : > { %2199 = vrsqrt.f32 %v755_v22  ;;  %v661_v39 = vmul.f32 %v2769_v17, %v2769_v17  ;;  %v660_v11 = vmul.f32 %v2773_v23, %v2773_v23  ;;  %v725_v54 = vsub.f32 %v2501_v50, %v2769_v17 }
  0xf3   : > { %2201 = vrsqrt.f32 %v754_v45  ;;  %v577_v5 = vpop.xlane.xlu1 %576  ;;  %v574_v6 = vpop.xlane.xlu0 %573  ;;  %v724_v4 = vsub.f32 %v2504_v51, %v2773_v23 }
  0xf4   : > { %v2196_v14 = vpop.eup %2195  ;;  %v629_v18 = vmul.f32 0.015625, %v577_v5  ;;  %v628_v19 = vmul.f32 0.015625, %v574_v6 }
  0xf5   : > { %v2198_v27 = vpop.eup %2197  ;;  %v817_v28 = vmul.f32 %v2196_v14, %v721_v15 }
  0xf6   : > { %v693_v29 = vsub.f32 %v629_v18, %v661_v39  ;;  %v692_v0 = vsub.f32 %v628_v19, %v660_v11  ;;  %v816_v26 = vmul.f32 %v2198_v27, %v720_v16 }
  0xf7   : > { %v422_v30 = vpop.xlane.xlu1 %421  ;;  %v419_v31 = vpop.xlane.xlu0 %418 }
  0xf8   : > { %v757_v32 = vadd.f32 1e-05, %v693_v29  ;;  %v756_v10 = vadd.f32 1e-05, %v692_v0  ;;  %v2785_v38 = vmul.f32 0.015625, %v422_v30  ;;  %2032 = vmatprep.mubr.msk.f32.mxu0 %vm350_vm0, %v816_v26  ;;  %2096 = vmatprep.mubr.msk.f32.mxu1 %vm350_vm0, %v816_v26  ;;  %v2789_v33 = vmul.f32 0.015625, %v419_v31 }
  0xf9   : > { %2033 = vmatmul.mubr.msk.f32.gmra.mrb[16].mxu0 %vm350_vm0, %v817_v28  ;;  %2097 = vmatmul.mubr.msk.f32.gmra.mrb[16].mxu1 %vm350_vm0, %v817_v28 }
  0xfa   : > { %2203 = vrsqrt.f32 %v757_v32  ;;  %v663_v59 = vmul.f32 %v2785_v38, %v2785_v38  ;;  %v662_v41 = vmul.f32 %v2789_v33, %v2789_v33  ;;  %v727_v18 = vsub.f32 %v2517_v60, %v2785_v38 }
  0xfb   : > { %2205 = vrsqrt.f32 %v756_v10  ;;  %v583_v37 = vpop.xlane.xlu1 %582  ;;  %v580_v12 = vpop.xlane.xlu0 %579  ;;  %v726_v29 = vsub.f32 %v2520_v61, %v2789_v33 }
  0xfc   : > { %v2200_v25 = vpop.eup %2199  ;;  %v631_v44 = vmul.f32 0.015625, %v583_v37  ;;  %v630_v62 = vmul.f32 0.015625, %v580_v12 }
  0xfd   : > { %v2202_v46 = vpop.eup %2201  ;;  %v819_v49 = vmul.f32 %v2200_v25, %v723_v9 }
  0xfe   : > { %v695_v1 = vsub.f32 %v631_v44, %v663_v59  ;;  %v694_v3 = vsub.f32 %v630_v62, %v662_v41  ;;  %v818_v52 = vmul.f32 %v2202_v46, %v722_v40 }
  0xff   : > { %v428_v53 = vpop.xlane.xlu1 %427  ;;  %v425_v24 = vpop.xlane.xlu0 %424 }
 0x100   : > { %v759_v42 = vadd.f32 1e-05, %v695_v1  ;;  %v758_v34 = vadd.f32 1e-05, %v694_v3  ;;  %v2801_v58 = vmul.f32 0.015625, %v428_v53  ;;  %2035 = vmatprep.mubr.msk.f32.mxu0 %vm350_vm0, %v818_v52  ;;  %2099 = vmatprep.mubr.msk.f32.mxu1 %vm350_vm0, %v818_v52  ;;  %v2805_v43 = vmul.f32 0.015625, %v425_v24 }
 0x101   : > { %2036 = vmatmul.mubr.msk.f32.gmra.mrb[18].mxu0 %vm350_vm0, %v819_v49  ;;  %2100 = vmatmul.mubr.msk.f32.gmra.mrb[18].mxu1 %vm350_vm0, %v819_v49 }
 0x102   : > { %2207 = vrsqrt.f32 %v759_v42  ;;  %v665_v13 = vmul.f32 %v2801_v58, %v2801_v58  ;;  %v664_v2 = vmul.f32 %v2805_v43, %v2805_v43  ;;  %v729_v40 = vsub.f32 %v2533_v7, %v2801_v58 }
 0x103   : > { %2209 = vrsqrt.f32 %v758_v34  ;;  %v589_v55 = vpop.xlane.xlu1 %588  ;;  %v586_v56 = vpop.xlane.xlu0 %585  ;;  %v728_v46 = vsub.f32 %v2536_v8, %v2805_v43 }
 0x104   : > { %v2204_v63 = vpop.eup %2203  ;;  %v633_v57 = vmul.f32 0.015625, %v589_v55  ;;  %v632_v22 = vmul.f32 0.015625, %v586_v56 }
 0x105   : > { %v2206_v45 = vpop.eup %2205  ;;  %v821_v39 = vmul.f32 %v2204_v63, %v725_v54 }
 0x106   : > { %v697_v15 = vsub.f32 %v633_v57, %v665_v13  ;;  %v696_v5 = vsub.f32 %v632_v22, %v664_v2  ;;  %v820_v6 = vmul.f32 %v2206_v45, %v724_v4 }
 0x107   : > { %v434_v14 = vpop.xlane.xlu1 %433  ;;  %v431_v16 = vpop.xlane.xlu0 %430 }
 0x108   : > { %v761_v50 = vadd.f32 1e-05, %v697_v15  ;;  %v760_v17 = vadd.f32 1e-05, %v696_v5  ;;  %v2817_v11 = vmul.f32 0.015625, %v434_v14  ;;  %2038 = vmatprep.mubr.msk.f32.mxu0 %vm350_vm0, %v820_v6  ;;  %2102 = vmatprep.mubr.msk.f32.mxu1 %vm350_vm0, %v820_v6  ;;  %v2821_v51 = vmul.f32 0.015625, %v431_v16 }
 0x109   : > { %2039 = vmatmul.mubr.msk.f32.gmra.mrb[20].mxu0 %vm350_vm0, %v821_v39  ;;  %2103 = vmatmul.mubr.msk.f32.gmra.mrb[20].mxu1 %vm350_vm0, %v821_v39 }
 0x10a   : > { %2211 = vrsqrt.f32 %v761_v50  ;;  %v667_v23 = vmul.f32 %v2817_v11, %v2817_v11  ;;  %v666_v0 = vmul.f32 %v2821_v51, %v2821_v51  ;;  %v731_v43 = vsub.f32 %v2549_v20, %v2817_v11 }
 0x10b   : > { %2213 = vrsqrt.f32 %v760_v17  ;;  %v595_v19 = vpop.xlane.xlu1 %594  ;;  %v592_v27 = vpop.xlane.xlu0 %591  ;;  %v730_v57 = vsub.f32 %v2552_v21, %v2821_v51 }
 0x10c   : > { %v2208_v28 = vpop.eup %2207  ;;  %v635_v26 = vmul.f32 0.015625, %v595_v19  ;;  %v634_v30 = vmul.f32 0.015625, %v592_v27 }
 0x10d   : > { %v2210_v31 = vpop.eup %2209  ;;  %v823_v32 = vmul.f32 %v2208_v28, %v727_v18 }
 0x10e   : > { %v699_v10 = vsub.f32 %v635_v26, %v667_v23  ;;  %v698_v59 = vsub.f32 %v634_v30, %v666_v0  ;;  %v822_v9 = vmul.f32 %v2210_v31, %v726_v29 }
 0x10f   : > { %v440_v37 = vpop.xlane.xlu1 %439  ;;  %v437_v12 = vpop.xlane.xlu0 %436 }
 0x110   : > { %v763_v60 = vadd.f32 1e-05, %v699_v10  ;;  %v762_v38 = vadd.f32 1e-05, %v698_v59  ;;  %v477_v25 = vmul.f32 0.015625, %v440_v37  ;;  %2041 = vmatprep.mubr.msk.f32.mxu0 %vm350_vm0, %v822_v9  ;;  %2105 = vmatprep.mubr.msk.f32.mxu1 %vm350_vm0, %v822_v9  ;;  %v476_v61 = vmul.f32 0.015625, %v437_v12 }
 0x111   : > { %2042 = vmatmul.mubr.msk.f32.gmra.mrb[22].mxu0 %vm350_vm0, %v823_v32  ;;  %2106 = vmatmul.mubr.msk.f32.gmra.mrb[22].mxu1 %vm350_vm0, %v823_v32 }
 0x112   : > { %2215 = vrsqrt.f32 %v763_v60  ;;  %v669_v33 = vmul.f32 %v477_v25, %v477_v25  ;;  %v668_v49 = vmul.f32 %v476_v61, %v476_v61  ;;  %v733_v20 = vsub.f32 %v2565_v35, %v477_v25 }
 0x113   : > { %2217 = vrsqrt.f32 %v762_v38  ;;  %v601_v41 = vpop.xlane.xlu1 %600  ;;  %v598_v44 = vpop.xlane.xlu0 %597  ;;  %v732_v11 = vsub.f32 %v2568_v36, %v476_v61 }
 0x114   : > { %v2212_v62 = vpop.eup %2211  ;;  %v637_v1 = vmul.f32 0.015625, %v601_v41  ;;  %v636_v3 = vmul.f32 0.015625, %v598_v44 }
 0x115   : > { %v2214_v52 = vpop.eup %2213  ;;  %v825_v53 = vmul.f32 %v2212_v62, %v729_v40 }
 0x116   : > { %v701_v24 = vsub.f32 %v637_v1, %v669_v33  ;;  %v700_v42 = vsub.f32 %v636_v3, %v668_v49  ;;  %v824_v34 = vmul.f32 %v2214_v52, %v728_v46 }
 0x117   : > { %v446_v13 = vpop.xlane.xlu1 %445  ;;  %v443_v54 = vpop.xlane.xlu0 %442 }
 0x118   : > { %v765_v55 = vadd.f32 1e-05, %v701_v24  ;;  %v764_v56 = vadd.f32 1e-05, %v700_v42  ;;  %v479_v7 = vmul.f32 0.015625, %v446_v13  ;;  %2044 = vmatprep.mubr.msk.f32.mxu0 %vm350_vm0, %v824_v34  ;;  %2108 = vmatprep.mubr.msk.f32.mxu1 %vm350_vm0, %v824_v34  ;;  %v478_v58 = vmul.f32 0.015625, %v443_v54 }
 0x119   : > { %2045 = vmatmul.mubr.msk.f32.gmra.mrb[24].mxu0 %vm350_vm0, %v825_v53  ;;  %2109 = vmatmul.mubr.msk.f32.gmra.mrb[24].mxu1 %vm350_vm0, %v825_v53 }
 0x11a   : > { %2219 = vrsqrt.f32 %v765_v55  ;;  %v671_v8 = vmul.f32 %v479_v7, %v479_v7  ;;  %v670_v22 = vmul.f32 %v478_v58, %v478_v58  ;;  %v735_v19 = vsub.f32 %v2581_v47, %v479_v7  ;;  %v2868_v47 = vld [vmem:[%s3085_s3] ss:$0 sm:$0xff] }
 0x11b   : > { %2221 = vrsqrt.f32 %v764_v56  ;;  %v607_v63 = vpop.xlane.xlu1 %606  ;;  %v604_v4 = vpop.xlane.xlu0 %603  ;;  %v734_v35 = vsub.f32 %v2584_v48, %v478_v58  ;;  %v2873_v48 = vld [vmem:[%s3087_s5] ss:$0 sm:$0xff] }
 0x11c   : > { %v2216_v2 = vpop.eup %2215  ;;  %v639_v45 = vmul.f32 0.015625, %v607_v63  ;;  %v638_v39 = vmul.f32 0.015625, %v604_v4 }
 0x11d   : > { %v2218_v15 = vpop.eup %2217  ;;  %v827_v5 = vmul.f32 %v2216_v2, %v731_v43 }
 0x11e   : > { %v703_v6 = vsub.f32 %v639_v45, %v671_v8  ;;  %v702_v14 = vsub.f32 %v638_v39, %v670_v22  ;;  %v826_v16 = vmul.f32 %v2218_v15, %v730_v57 }
 0x11f   : > { %v1448_v36 = vpop.permute.xlu1 %1447 }
 0x120   : > { %v767_v50 = vadd.f32 1e-05, %v703_v6  ;;  %v766_v17 = vadd.f32 1e-05, %v702_v14  ;;  %2047 = vmatprep.mubr.msk.f32.mxu0 %vm350_vm0, %v826_v16  ;;  %2111 = vmatprep.mubr.msk.f32.mxu1 %vm350_vm0, %v826_v16 }
 0x121   : > { %2048 = vmatmul.mubr.msk.f32.gmra.mrb[26].mxu0 %vm350_vm0, %v827_v5  ;;  %2112 = vmatmul.mubr.msk.f32.gmra.mrb[26].mxu1 %vm350_vm0, %v827_v5 }
 0x122   : > { %2223 = vrsqrt.f32 %v767_v50 }
 0x123   : > { %2225 = vrsqrt.f32 %v766_v17  ;;  %v1453_v26 = vpop.permute.xlu1 %1452  ;;  %v1443_v31 = vpop.permute.xlu0 %1442 }
 0x124   : > { %v2220_v21 = vpop.eup %2219 }
 0x125   : > { %v2222_v51 = vpop.eup %2221  ;;  %v829_v23 = vmul.f32 %v2220_v21, %v733_v20 }
 0x126   : > { %v828_v18 = vmul.f32 %v2222_v51, %v732_v11 }
 0x127   : > { %v1458_v30 = vpop.permute.xlu1 %1457 }
 0x128   : > { %2050 = vmatprep.mubr.msk.f32.mxu0 %vm350_vm0, %v828_v18  ;;  %2114 = vmatprep.mubr.msk.f32.mxu1 %vm350_vm0, %v828_v18 }
 0x129   : > { %2051 = vmatmul.mubr.msk.f32.gmra.mrb[28].mxu0 %vm350_vm0, %v829_v23  ;;  %2115 = vmatmul.mubr.msk.f32.gmra.mrb[28].mxu1 %vm350_vm0, %v829_v23 }
 0x12b   : > { %v1463_v41 = vpop.permute.xlu1 %1462 }
 0x12c   : > { %v2224_v27 = vpop.eup %2223 }
 0x12d   : > { %v2226_v28 = vpop.eup %2225  ;;  %v831_v29 = vmul.f32 %v2224_v27, %v735_v19 }
 0x12e   : > { %v830_v0 = vmul.f32 %v2226_v28, %v734_v35 }
 0x12f   : > { %v1468_v54 = vpop.permute.xlu1 %1467 }
 0x130   : > { %2053 = vmatprep.mubr.msk.f32.mxu0 %vm350_vm0, %v830_v0  ;;  %2117 = vmatprep.mubr.msk.f32.mxu1 %vm350_vm0, %v830_v0 }
 0x131   : > { %2054 = vmatmul.mubr.msk.f32.gmra.mrb[30].mxu0 %vm350_vm0, %v831_v29  ;;  %2118 = vmatmul.mubr.msk.f32.gmra.mrb[30].mxu1 %vm350_vm0, %v831_v29 }
 0x133   : > { %v1473_v22 = vpop.permute.xlu1 %1472 }
 0x137   : > { %v1478_v17 = vpop.permute.xlu1 %1477 }
 0x18e   : > { %v2010_v32 = vpop.f32.mrb[0].mxu0  ;;  %v2074_v10 = vpop.f32.mrb[0].mxu1 }
 0x18f   : > { %v1047_v59 = vadd.f32 %v2010_v32, %v2868_v47  ;;  %v1287_v9 = vadd.f32 %v2074_v10, %v2873_v48  ;;  %v1041_v37 = vpop.f32.mrb[1].mxu0  ;;  %v1281_v12 = vpop.f32.mrb[1].mxu1 }
 0x190   : > { %v1042_v60 = vadd.f32 %v2868_v47, %v1041_v37  ;;  %v1282_v38 = vadd.f32 %v2873_v48, %v1281_v12 }
 0x191   : > { %v1601_v25 = vmul.f32 %v1448_v36, %v1047_v59  ;;  %v1666_v61 = vmul.f32 %v1448_v36, %v1287_v9  ;;  %v1488_v36 = vpop.permute.xlu0 %1487 }
 0x192   : > { %v1600_v33 = vmul.f32 %v1443_v31, %v1042_v60  ;;  %v1665_v40 = vmul.f32 %v1443_v31, %v1282_v38  ;;  %v1483_v31 = vpop.permute.xlu1 %1482 }
 0x193   : > { %1634 = vst.msk [vmem:[%s2881_s8 + $0x8] sm:$0xff] %vm1632_vm1, %v1601_v25  ;;  %1698 = vst.msk [vmem:[%s2887_s11 + $0x8] sm:$0xff] %vm1632_vm1, %v1666_v61 }
 0x194   : > { %1633 = vst.msk [vmem:[%s2881_s8] sm:$0xff] %vm1632_vm1, %v1600_v33  ;;  %1697 = vst.msk [vmem:[%s2887_s11] sm:$0xff] %vm1632_vm1, %v1665_v40  ;;  %v2013_v44 = vpop.f32.mrb[2].mxu0  ;;  %v2077_v62 = vpop.f32.mrb[2].mxu1 }
 0x195   : > { %v1057_v46 = vadd.f32 %v2013_v44, %v2868_v47  ;;  %v1297_v49 = vadd.f32 %v2077_v62, %v2873_v48  ;;  %v1051_v1 = vpop.f32.mrb[3].mxu0  ;;  %v1291_v3 = vpop.f32.mrb[3].mxu1 }
 0x196   : > { %v1052_v52 = vadd.f32 %v2868_v47, %v1051_v1  ;;  %v1292_v53 = vadd.f32 %v2873_v48, %v1291_v3  ;;  %v1498_v33 = vpop.permute.xlu0 %1497  ;;  %v1493_v44 = vpop.permute.xlu1 %1492 }
 0x197   : > { %v1603_v24 = vmul.f32 %v1458_v30, %v1057_v46  ;;  %v1668_v42 = vmul.f32 %v1458_v30, %v1297_v49 }
 0x198   : > { %v1602_v34 = vmul.f32 %v1453_v26, %v1052_v52  ;;  %v1667_v13 = vmul.f32 %v1453_v26, %v1292_v53 }
 0x199   : > { %1636 = vst.msk [vmem:[%s2881_s8 + $0x18] sm:$0xff] %vm1632_vm1, %v1603_v24  ;;  %1700 = vst.msk [vmem:[%s2887_s11 + $0x18] sm:$0xff] %vm1632_vm1, %v1668_v42 }
 0x19a   : > { %1635 = vst.msk [vmem:[%s2881_s8 + $0x10] sm:$0xff] %vm1632_vm1, %v1602_v34  ;;  %1699 = vst.msk [vmem:[%s2887_s11 + $0x10] sm:$0xff] %vm1632_vm1, %v1667_v13  ;;  %v1508_v13 = vpop.permute.xlu0 %1507 }
 0x19c   : > { %v2016_v55 = vpop.f32.mrb[4].mxu0  ;;  %v2080_v56 = vpop.f32.mrb[4].mxu1 }
 0x19d   : > { %v1067_v7 = vadd.f32 %v2016_v55, %v2868_v47  ;;  %v1307_v58 = vadd.f32 %v2080_v56, %v2873_v48  ;;  %v1061_v8 = vpop.f32.mrb[5].mxu0  ;;  %v1301_v43 = vpop.f32.mrb[5].mxu1 }
 0x19e   : > { %v1062_v63 = vadd.f32 %v2868_v47, %v1061_v8  ;;  %v1302_v4 = vadd.f32 %v2873_v48, %v1301_v43  ;;  %v1503_v56 = vpop.permute.xlu1 %1502 }
 0x19f   : > { %v1605_v2 = vmul.f32 %v1468_v54, %v1067_v7  ;;  %v1670_v57 = vmul.f32 %v1468_v54, %v1307_v58 }
 0x1a0   : > { %v1604_v45 = vmul.f32 %v1463_v41, %v1062_v63  ;;  %v1669_v39 = vmul.f32 %v1463_v41, %v1302_v4 }
 0x1a1   : > { %1638 = vst.msk [vmem:[%s2881_s8 + $0x28] sm:$0xff] %vm1632_vm1, %v1605_v2  ;;  %1702 = vst.msk [vmem:[%s2887_s11 + $0x28] sm:$0xff] %vm1632_vm1, %v1670_v57 }
 0x1a2   : > { %1637 = vst.msk [vmem:[%s2881_s8 + $0x20] sm:$0xff] %vm1632_vm1, %v1604_v45  ;;  %1701 = vst.msk [vmem:[%s2887_s11 + $0x20] sm:$0xff] %vm1632_vm1, %v1669_v39  ;;  %v1518_v39 = vpop.permute.xlu0 %1517 }
 0x1a4   : > { %v2019_v15 = vpop.f32.mrb[6].mxu0  ;;  %v2083_v5 = vpop.f32.mrb[6].mxu1 }
 0x1a5   : > { %v1077_v6 = vadd.f32 %v2019_v15, %v2868_v47  ;;  %v1317_v14 = vadd.f32 %v2083_v5, %v2873_v48  ;;  %v1071_v16 = vpop.f32.mrb[7].mxu0  ;;  %v1311_v50 = vpop.f32.mrb[7].mxu1 }
 0x1a6   : > { %v1072_v20 = vadd.f32 %v2868_v47, %v1071_v16  ;;  %v1312_v21 = vadd.f32 %v2873_v48, %v1311_v50 }
 0x1a7   : > { %v1607_v11 = vmul.f32 %v1478_v17, %v1077_v6  ;;  %v1672_v51 = vmul.f32 %v1478_v17, %v1317_v14  ;;  %v1513_v6 = vpop.permute.xlu1 %1512 }
 0x1a8   : > { %v1606_v23 = vmul.f32 %v1473_v22, %v1072_v20  ;;  %v1671_v18 = vmul.f32 %v1473_v22, %v1312_v21 }
 0x1a9   : > { %1640 = vst.msk [vmem:[%s2881_s8 + $0x38] sm:$0xff] %vm1632_vm1, %v1607_v11  ;;  %1704 = vst.msk [vmem:[%s2887_s11 + $0x38] sm:$0xff] %vm1632_vm1, %v1672_v51 }
 0x1aa   : > { %1639 = vst.msk [vmem:[%s2881_s8 + $0x30] sm:$0xff] %vm1632_vm1, %v1606_v23  ;;  %1703 = vst.msk [vmem:[%s2887_s11 + $0x30] sm:$0xff] %vm1632_vm1, %v1671_v18 }
 0x1ac   : > { %v2022_v19 = vpop.f32.mrb[8].mxu0  ;;  %v2086_v27 = vpop.f32.mrb[8].mxu1 }
 0x1ad   : > { %v1087_v35 = vadd.f32 %v2022_v19, %v2868_v47  ;;  %v1327_v28 = vadd.f32 %v2086_v27, %v2873_v48  ;;  %v1081_v29 = vpop.f32.mrb[9].mxu0  ;;  %v1321_v0 = vpop.f32.mrb[9].mxu1 }
 0x1ae   : > { %v1082_v26 = vadd.f32 %v2868_v47, %v1081_v29  ;;  %v1322_v30 = vadd.f32 %v2873_v48, %v1321_v0  ;;  %v1528_v19 = vpop.permute.xlu0 %1527 }
 0x1af   : > { %v1609_v32 = vmul.f32 %v1488_v36, %v1087_v35  ;;  %v1674_v10 = vmul.f32 %v1488_v36, %v1327_v28  ;;  %v1523_v28 = vpop.permute.xlu1 %1522 }
 0x1b0   : > { %v1608_v59 = vmul.f32 %v1483_v31, %v1082_v26  ;;  %v1673_v9 = vmul.f32 %v1483_v31, %v1322_v30 }
 0x1b1   : > { %1642 = vst.msk [vmem:[%s2881_s8 + $0x48] sm:$0xff] %vm1632_vm1, %v1609_v32  ;;  %1706 = vst.msk [vmem:[%s2887_s11 + $0x48] sm:$0xff] %vm1632_vm1, %v1674_v10 }
 0x1b2   : > { %1641 = vst.msk [vmem:[%s2881_s8 + $0x40] sm:$0xff] %vm1632_vm1, %v1608_v59  ;;  %1705 = vst.msk [vmem:[%s2887_s11 + $0x40] sm:$0xff] %vm1632_vm1, %v1673_v9 }
 0x1b4   : > { %v2025_v37 = vpop.f32.mrb[10].mxu0  ;;  %v2089_v12 = vpop.f32.mrb[10].mxu1 }
 0x1b5   : > { %v1097_v60 = vadd.f32 %v2025_v37, %v2868_v47  ;;  %v1337_v38 = vadd.f32 %v2089_v12, %v2873_v48  ;;  %v1091_v25 = vpop.f32.mrb[11].mxu0  ;;  %v1331_v61 = vpop.f32.mrb[11].mxu1 }
 0x1b6   : > { %v1092_v40 = vadd.f32 %v2868_v47, %v1091_v25  ;;  %v1332_v41 = vadd.f32 %v2873_v48, %v1331_v61  ;;  %v1538_v37 = vpop.permute.xlu0 %1537 }
 0x1b7   : > { %v1611_v62 = vmul.f32 %v1498_v33, %v1097_v60  ;;  %v1676_v46 = vmul.f32 %v1498_v33, %v1337_v38  ;;  %v1533_v38 = vpop.permute.xlu1 %1532 }
 0x1b8   : > { %v1610_v49 = vmul.f32 %v1493_v44, %v1092_v40  ;;  %v1675_v1 = vmul.f32 %v1493_v44, %v1332_v41 }
 0x1b9   : > { %1644 = vst.msk [vmem:[%s2881_s8 + $0x58] sm:$0xff] %vm1632_vm1, %v1611_v62  ;;  %1708 = vst.msk [vmem:[%s2887_s11 + $0x58] sm:$0xff] %vm1632_vm1, %v1676_v46 }
 0x1ba   : > { %1643 = vst.msk [vmem:[%s2881_s8 + $0x50] sm:$0xff] %vm1632_vm1, %v1610_v49  ;;  %1707 = vst.msk [vmem:[%s2887_s11 + $0x50] sm:$0xff] %vm1632_vm1, %v1675_v1 }
 0x1bc   : > { %v2028_v3 = vpop.f32.mrb[12].mxu0  ;;  %v2092_v52 = vpop.f32.mrb[12].mxu1 }
 0x1bd   : > { %v1107_v53 = vadd.f32 %v2028_v3, %v2868_v47  ;;  %v1347_v24 = vadd.f32 %v2092_v52, %v2873_v48  ;;  %v1101_v42 = vpop.f32.mrb[13].mxu0  ;;  %v1341_v34 = vpop.f32.mrb[13].mxu1 }
 0x1be   : > { %v1102_v54 = vadd.f32 %v2868_v47, %v1101_v42  ;;  %v1342_v55 = vadd.f32 %v2873_v48, %v1341_v34  ;;  %v1548_v3 = vpop.permute.xlu0 %1547 }
 0x1bf   : > { %v1613_v7 = vmul.f32 %v1508_v13, %v1107_v53  ;;  %v1678_v58 = vmul.f32 %v1508_v13, %v1347_v24  ;;  %v1543_v24 = vpop.permute.xlu1 %1542 }
 0x1c0   : > { %v1612_v8 = vmul.f32 %v1503_v56, %v1102_v54  ;;  %v1677_v43 = vmul.f32 %v1503_v56, %v1342_v55 }
 0x1c1   : > { %1646 = vst.msk [vmem:[%s2881_s8 + $0x68] sm:$0xff] %vm1632_vm1, %v1613_v7  ;;  %1710 = vst.msk [vmem:[%s2887_s11 + $0x68] sm:$0xff] %vm1632_vm1, %v1678_v58 }
 0x1c2   : > { %1645 = vst.msk [vmem:[%s2881_s8 + $0x60] sm:$0xff] %vm1632_vm1, %v1612_v8  ;;  %1709 = vst.msk [vmem:[%s2887_s11 + $0x60] sm:$0xff] %vm1632_vm1, %v1677_v43 }
 0x1c4   : > { %v2031_v63 = vpop.f32.mrb[14].mxu0  ;;  %v2095_v4 = vpop.f32.mrb[14].mxu1 }
 0x1c5   : > { %v1117_v2 = vadd.f32 %v2031_v63, %v2868_v47  ;;  %v1357_v57 = vadd.f32 %v2095_v4, %v2873_v48  ;;  %v1111_v22 = vpop.f32.mrb[15].mxu0  ;;  %v1351_v45 = vpop.f32.mrb[15].mxu1 }
 0x1c6   : > { %v1112_v15 = vadd.f32 %v2868_v47, %v1111_v22  ;;  %v1352_v5 = vadd.f32 %v2873_v48, %v1351_v45  ;;  %v1558_v63 = vpop.permute.xlu0 %1557 }
 0x1c7   : > { %v1615_v14 = vmul.f32 %v1518_v39, %v1117_v2  ;;  %v1680_v16 = vmul.f32 %v1518_v39, %v1357_v57  ;;  %v1553_v57 = vpop.permute.xlu1 %1552 }
 0x1c8   : > { %v1614_v50 = vmul.f32 %v1513_v6, %v1112_v15  ;;  %v1679_v17 = vmul.f32 %v1513_v6, %v1352_v5 }
 0x1c9   : > { %1648 = vst.msk [vmem:[%s2881_s8 + $0x78] sm:$0xff] %vm1632_vm1, %v1615_v14  ;;  %1712 = vst.msk [vmem:[%s2887_s11 + $0x78] sm:$0xff] %vm1632_vm1, %v1680_v16 }
 0x1ca   : > { %1647 = vst.msk [vmem:[%s2881_s8 + $0x70] sm:$0xff] %vm1632_vm1, %v1614_v50  ;;  %1711 = vst.msk [vmem:[%s2887_s11 + $0x70] sm:$0xff] %vm1632_vm1, %v1679_v17 }
 0x1cc   : > { %v2034_v20 = vpop.f32.mrb[16].mxu0  ;;  %v2098_v21 = vpop.f32.mrb[16].mxu1 }
 0x1cd   : > { %v1127_v11 = vadd.f32 %v2034_v20, %v2868_v47  ;;  %v1367_v51 = vadd.f32 %v2098_v21, %v2873_v48  ;;  %v1121_v23 = vpop.f32.mrb[17].mxu0  ;;  %v1361_v18 = vpop.f32.mrb[17].mxu1 }
 0x1ce   : > { %v1122_v27 = vadd.f32 %v2868_v47, %v1121_v23  ;;  %v1362_v35 = vadd.f32 %v2873_v48, %v1361_v18  ;;  %v1568_v20 = vpop.permute.xlu0 %1567 }
 0x1cf   : > { %v1617_v29 = vmul.f32 %v1528_v19, %v1127_v11  ;;  %v1682_v0 = vmul.f32 %v1528_v19, %v1367_v51  ;;  %v1563_v51 = vpop.permute.xlu1 %1562 }
 0x1d0   : > { %v1616_v36 = vmul.f32 %v1523_v28, %v1122_v27  ;;  %v1681_v26 = vmul.f32 %v1523_v28, %v1362_v35 }
 0x1d1   : > { %1650 = vst.msk [vmem:[%s2881_s8 + $0x88] sm:$0xff] %vm1632_vm1, %v1617_v29  ;;  %1714 = vst.msk [vmem:[%s2887_s11 + $0x88] sm:$0xff] %vm1632_vm1, %v1682_v0 }
 0x1d2   : > { %1649 = vst.msk [vmem:[%s2881_s8 + $0x80] sm:$0xff] %vm1632_vm1, %v1616_v36  ;;  %1713 = vst.msk [vmem:[%s2887_s11 + $0x80] sm:$0xff] %vm1632_vm1, %v1681_v26 }
 0x1d4   : > { %v2037_v30 = vpop.f32.mrb[18].mxu0  ;;  %v2101_v31 = vpop.f32.mrb[18].mxu1 }
 0x1d5   : > { %v1137_v32 = vadd.f32 %v2037_v30, %v2868_v47  ;;  %v1377_v10 = vadd.f32 %v2101_v31, %v2873_v48  ;;  %v1131_v59 = vpop.f32.mrb[19].mxu0  ;;  %v1371_v9 = vpop.f32.mrb[19].mxu1 }
 0x1d6   : > { %v1132_v12 = vadd.f32 %v2868_v47, %v1131_v59  ;;  %v1372_v60 = vadd.f32 %v2873_v48, %v1371_v9  ;;  %v1578_v30 = vpop.permute.xlu0 %1577 }
 0x1d7   : > { %v1619_v25 = vmul.f32 %v1538_v37, %v1137_v32  ;;  %v1684_v61 = vmul.f32 %v1538_v37, %v1377_v10  ;;  %v1573_v10 = vpop.permute.xlu1 %1572 }
 0x1d8   : > { %v1618_v33 = vmul.f32 %v1533_v38, %v1132_v12  ;;  %v1683_v40 = vmul.f32 %v1533_v38, %v1372_v60 }
 0x1d9   : > { %1652 = vst.msk [vmem:[%s2881_s8 + $0x98] sm:$0xff] %vm1632_vm1, %v1619_v25  ;;  %1716 = vst.msk [vmem:[%s2887_s11 + $0x98] sm:$0xff] %vm1632_vm1, %v1684_v61 }
 0x1da   : > { %1651 = vst.msk [vmem:[%s2881_s8 + $0x90] sm:$0xff] %vm1632_vm1, %v1618_v33  ;;  %1715 = vst.msk [vmem:[%s2887_s11 + $0x90] sm:$0xff] %vm1632_vm1, %v1683_v40 }
 0x1dc   : > { %v2040_v41 = vpop.f32.mrb[20].mxu0  ;;  %v2104_v44 = vpop.f32.mrb[20].mxu1 }
 0x1dd   : > { %v1147_v62 = vadd.f32 %v2040_v41, %v2868_v47  ;;  %v1387_v46 = vadd.f32 %v2104_v44, %v2873_v48  ;;  %v1141_v49 = vpop.f32.mrb[21].mxu0  ;;  %v1381_v1 = vpop.f32.mrb[21].mxu1 }
 0x1de   : > { %v1142_v52 = vadd.f32 %v2868_v47, %v1141_v49  ;;  %v1382_v53 = vadd.f32 %v2873_v48, %v1381_v1  ;;  %v1588_v41 = vpop.permute.xlu0 %1587 }
 0x1df   : > { %v1621_v42 = vmul.f32 %v1548_v3, %v1147_v62  ;;  %v1686_v34 = vmul.f32 %v1548_v3, %v1387_v46  ;;  %v1583_v46 = vpop.permute.xlu1 %1582 }
 0x1e0   : > { %v1620_v13 = vmul.f32 %v1543_v24, %v1142_v52  ;;  %v1685_v54 = vmul.f32 %v1543_v24, %v1382_v53 }
 0x1e1   : > { %1654 = vst.msk [vmem:[%s2881_s8 + $0xa8] sm:$0xff] %vm1632_vm1, %v1621_v42  ;;  %1718 = vst.msk [vmem:[%s2887_s11 + $0xa8] sm:$0xff] %vm1632_vm1, %v1686_v34 }
 0x1e2   : > { %1653 = vst.msk [vmem:[%s2881_s8 + $0xa0] sm:$0xff] %vm1632_vm1, %v1620_v13  ;;  %1717 = vst.msk [vmem:[%s2887_s11 + $0xa0] sm:$0xff] %vm1632_vm1, %v1685_v54 }
 0x1e4   : > { %v2043_v55 = vpop.f32.mrb[22].mxu0  ;;  %v2107_v56 = vpop.f32.mrb[22].mxu1 }
 0x1e5   : > { %v1157_v7 = vadd.f32 %v2043_v55, %v2868_v47  ;;  %v1397_v58 = vadd.f32 %v2107_v56, %v2873_v48  ;;  %v1151_v8 = vpop.f32.mrb[23].mxu0  ;;  %v1391_v43 = vpop.f32.mrb[23].mxu1 }
 0x1e6   : > { %v1152_v4 = vadd.f32 %v2868_v47, %v1151_v8  ;;  %v1392_v2 = vadd.f32 %v2873_v48, %v1391_v43  ;;  %v1598_v55 = vpop.permute.xlu0 %1597 }
 0x1e7   : > { %v1623_v22 = vmul.f32 %v1558_v63, %v1157_v7  ;;  %v1688_v45 = vmul.f32 %v1558_v63, %v1397_v58  ;;  %v1593_v58 = vpop.permute.xlu1 %1592 }
 0x1e8   : > { %v1622_v39 = vmul.f32 %v1553_v57, %v1152_v4  ;;  %v1687_v15 = vmul.f32 %v1553_v57, %v1392_v2 }
 0x1e9   : > { %1656 = vst.msk [vmem:[%s2881_s8 + $0xb8] sm:$0xff] %vm1632_vm1, %v1623_v22  ;;  %1720 = vst.msk [vmem:[%s2887_s11 + $0xb8] sm:$0xff] %vm1632_vm1, %v1688_v45 }
 0x1ea   : > { %1655 = vst.msk [vmem:[%s2881_s8 + $0xb0] sm:$0xff] %vm1632_vm1, %v1622_v39  ;;  %1719 = vst.msk [vmem:[%s2887_s11 + $0xb0] sm:$0xff] %vm1632_vm1, %v1687_v15 }
 0x1ec   : > { %v2046_v5 = vpop.f32.mrb[24].mxu0  ;;  %v2110_v6 = vpop.f32.mrb[24].mxu1 }
 0x1ed   : > { %v1167_v14 = vadd.f32 %v2046_v5, %v2868_v47  ;;  %v1407_v16 = vadd.f32 %v2110_v6, %v2873_v48  ;;  %v1161_v50 = vpop.f32.mrb[25].mxu0  ;;  %v1401_v17 = vpop.f32.mrb[25].mxu1 }
 0x1ee   : > { %v1162_v21 = vadd.f32 %v2868_v47, %v1161_v50  ;;  %v1402_v11 = vadd.f32 %v2873_v48, %v1401_v17 }
 0x1ef   : > { %v1625_v23 = vmul.f32 %v1568_v20, %v1167_v14  ;;  %v1690_v18 = vmul.f32 %v1568_v20, %v1407_v16 }
 0x1f0   : > { %v1624_v19 = vmul.f32 %v1563_v51, %v1162_v21  ;;  %v1689_v27 = vmul.f32 %v1563_v51, %v1402_v11 }
 0x1f1   : > { %1658 = vst.msk [vmem:[%s2881_s8 + $0xc8] sm:$0xff] %vm1632_vm1, %v1625_v23  ;;  %1722 = vst.msk [vmem:[%s2887_s11 + $0xc8] sm:$0xff] %vm1632_vm1, %v1690_v18 }
 0x1f2   : > { %1657 = vst.msk [vmem:[%s2881_s8 + $0xc0] sm:$0xff] %vm1632_vm1, %v1624_v19  ;;  %1721 = vst.msk [vmem:[%s2887_s11 + $0xc0] sm:$0xff] %vm1632_vm1, %v1689_v27 }
 0x1f4   : > { %v2049_v35 = vpop.f32.mrb[26].mxu0  ;;  %v2113_v28 = vpop.f32.mrb[26].mxu1 }
 0x1f5   : > { %v1177_v29 = vadd.f32 %v2049_v35, %v2868_v47  ;;  %v1417_v0 = vadd.f32 %v2113_v28, %v2873_v48  ;;  %v1171_v36 = vpop.f32.mrb[27].mxu0  ;;  %v1411_v26 = vpop.f32.mrb[27].mxu1 }
 0x1f6   : > { %v1172_v31 = vadd.f32 %v2868_v47, %v1171_v36  ;;  %v1412_v32 = vadd.f32 %v2873_v48, %v1411_v26 }
 0x1f7   : > { %v1627_v59 = vmul.f32 %v1578_v30, %v1177_v29  ;;  %v1692_v9 = vmul.f32 %v1578_v30, %v1417_v0 }
 0x1f8   : > { %v1626_v37 = vmul.f32 %v1573_v10, %v1172_v31  ;;  %v1691_v12 = vmul.f32 %v1573_v10, %v1412_v32 }
 0x1f9   : > { %1660 = vst.msk [vmem:[%s2881_s8 + $0xd8] sm:$0xff] %vm1632_vm1, %v1627_v59  ;;  %1724 = vst.msk [vmem:[%s2887_s11 + $0xd8] sm:$0xff] %vm1632_vm1, %v1692_v9 }
 0x1fa   : > { %1659 = vst.msk [vmem:[%s2881_s8 + $0xd0] sm:$0xff] %vm1632_vm1, %v1626_v37  ;;  %1723 = vst.msk [vmem:[%s2887_s11 + $0xd0] sm:$0xff] %vm1632_vm1, %v1691_v12 }
 0x1fc   : > { %v2052_v60 = vpop.f32.mrb[28].mxu0  ;;  %v2116_v38 = vpop.f32.mrb[28].mxu1 }
 0x1fd   : > { %v1187_v25 = vadd.f32 %v2052_v60, %v2868_v47  ;;  %v1427_v61 = vadd.f32 %v2116_v38, %v2873_v48  ;;  %v1181_v33 = vpop.f32.mrb[29].mxu0  ;;  %v1421_v40 = vpop.f32.mrb[29].mxu1 }
 0x1fe   : > { %v1182_v44 = vadd.f32 %v2868_v47, %v1181_v33  ;;  %v1422_v62 = vadd.f32 %v2873_v48, %v1421_v40 }
 0x1ff   : > { %v1629_v49 = vmul.f32 %v1588_v41, %v1187_v25  ;;  %v1694_v1 = vmul.f32 %v1588_v41, %v1427_v61 }
 0x200   : > { %v1628_v3 = vmul.f32 %v1583_v46, %v1182_v44  ;;  %v1693_v52 = vmul.f32 %v1583_v46, %v1422_v62 }
 0x201   : > { %1662 = vst.msk [vmem:[%s2881_s8 + $0xe8] sm:$0xff] %vm1632_vm1, %v1629_v49  ;;  %1726 = vst.msk [vmem:[%s2887_s11 + $0xe8] sm:$0xff] %vm1632_vm1, %v1694_v1 }
 0x202   : > { %1661 = vst.msk [vmem:[%s2881_s8 + $0xe0] sm:$0xff] %vm1632_vm1, %v1628_v3  ;;  %1725 = vst.msk [vmem:[%s2887_s11 + $0xe0] sm:$0xff] %vm1632_vm1, %v1693_v52 }
 0x204   : > { %v2055_v53 = vpop.f32.mrb[30].mxu0  ;;  %v2119_v24 = vpop.f32.mrb[30].mxu1 }
 0x205   : > { %v1197_v42 = vadd.f32 %v2055_v53, %v2868_v47  ;;  %v1437_v34 = vadd.f32 %v2119_v24, %v2873_v48  ;;  %v1191_v13 = vpop.f32.mrb[31].mxu0  ;;  %v1431_v54 = vpop.f32.mrb[31].mxu1 }
 0x206   : > { %v1192_v56 = vadd.f32 %v2868_v47, %v1191_v13  ;;  %v1432_v7 = vadd.f32 %v2873_v48, %v1431_v54 }
 0x207   : > { %v1631_v8 = vmul.f32 %v1598_v55, %v1197_v42  ;;  %v1696_v43 = vmul.f32 %v1598_v55, %v1437_v34 }
 0x208   : > { %v1630_v63 = vmul.f32 %v1593_v58, %v1192_v56  ;;  %v1695_v4 = vmul.f32 %v1593_v58, %v1432_v7 }
 0x209   : > { %1664 = vst.msk [vmem:[%s2881_s8 + $0xf8] sm:$0xff] %vm1632_vm1, %v1631_v8  ;;  %1728 = vst.msk [vmem:[%s2887_s11 + $0xf8] sm:$0xff] %vm1632_vm1, %v1696_v43 }
 0x20a   : > { %1663 = vst.msk [vmem:[%s2881_s8 + $0xf0] sm:$0xff] %vm1632_vm1, %v1630_v63  ;;  %1727 = vst.msk [vmem:[%s2887_s11 + $0xf0] sm:$0xff] %vm1632_vm1, %v1695_v4 }
 0x20b PF: > { %s18_s24 = sadd.s32 1, %s2233_s24  }
 0x20c   : > { %p15_p4 = scmp.ge.s32.totalorder %s18_s24, 4  }
 0x20e   :  { %17 = sbr.rel (!%p15_p4) target bundleno = 1 (0x1), region = 89 }

</bundles_post_ra>
